<compile_context>
chip_gen: v7x
topology: tpu7x:2x2x1
jax: 0.10.0
libtpu: 0.0.40
codegen_flags: <defaults>
</compile_context>

<pallas_src>
import math

import jax
import jax.numpy as jnp
import numpy as np
from jax.experimental import pallas as pl
from jax.experimental.pallas import tpu as pltpu

# Small, module-consistent shapes.
B, S, D = 2, 8, 32        # batch, sequence, d_model
H, DK = 4, 8              # heads, head dim (D = H * DK)
DFF = 64                  # feed-forward hidden dim
L = 2                     # number of encoder layers
EPS = 1e-6
SCALE = 1.0 / math.sqrt(DK)


def _layer_norm(x, alpha, beta):
    mean = jnp.mean(x, axis=-1, keepdims=True)
    diff = x - mean
    var = jnp.sum(diff * diff, axis=-1, keepdims=True) * (1.0 / (x.shape[-1] - 1))
    std = jnp.sqrt(var)
    # reciprocal on the EUP slot; approx=False keeps full precision.
    return alpha * (diff * pl.reciprocal(std + EPS)) + beta


def encoder_kernel(bias_ref, x_ref,
                   wqkv_ref, wo_ref, w1_ref, b1_ref, w2_ref, b2_ref,
                   ln1a_ref, ln1b_ref, ln2a_ref, ln2b_ref,
                   lnfa_ref, lnfb_ref,
                   o_ref):
    """Whole encoder stack, whole batch, in one invocation (no grid)."""
    x = x_ref[...]                                        # (B*S, D)
    bias = bias_ref[...]                                  # (H*B, S, S) additive mask

    for l in range(L):                                    # static unroll: layers
        # ---------- self-attention sublayer (pre-norm residual) ----------
        n1 = _layer_norm(x, ln1a_ref[l], ln1b_ref[l])
        # Fused Q/K/V projection: one (B*S, D) @ (D, 3D) matmul per layer.
        qkv = jnp.dot(n1, wqkv_ref[l], preferred_element_type=jnp.float32)
        qkv3 = qkv.reshape(B, S, 3 * D)                   # free leading-dim split

        # Stack head slices into an (H*B, S, DK) batch so the whole layer's
        # attention runs as ONE batched einsum + ONE softmax chain.
        q_bh = jnp.concatenate(
            [qkv3[:, :, h * DK:(h + 1) * DK] for h in range(H)], axis=0)
        k_bh = jnp.concatenate(
            [qkv3[:, :, D + h * DK:D + (h + 1) * DK] for h in range(H)], axis=0)
        v_bh = jnp.concatenate(
            [qkv3[:, :, 2 * D + h * DK:2 * D + (h + 1) * DK] for h in range(H)],
            axis=0)

        s = jnp.einsum('nqd,nkd->nqk', q_bh, k_bh,
                       preferred_element_type=jnp.float32) * SCALE + bias
        m = jnp.max(s, axis=-1, keepdims=True)
        p = jnp.exp(s - m)
        p = p * pl.reciprocal(jnp.sum(p, axis=-1, keepdims=True))
        o_bh = jnp.einsum('nqk,nkd->nqd', p, v_bh,
                          preferred_element_type=jnp.float32)   # (H*B, S, DK)

        # Re-join heads along lanes and do a single output projection matmul.
        attn = jnp.concatenate(
            [o_bh[h * B:(h + 1) * B].reshape(B * S, DK) for h in range(H)],
            axis=-1)                                           # (B*S, D)
        x = x + jnp.dot(attn, wo_ref[l], preferred_element_type=jnp.float32)
        # TODO(synk): dropout omitted (eval-mode identity).

        # ---------- feed-forward sublayer (pre-norm residual) ----------
        n2 = _layer_norm(x, ln2a_ref[l], ln2b_ref[l])
        h1 = jnp.maximum(
            jnp.dot(n2, w1_ref[l], preferred_element_type=jnp.float32) + b1_ref[l],
            0.0)
        x = x + jnp.dot(h1, w2_ref[l], preferred_element_type=jnp.float32) + b2_ref[l]

    # ---------- final LayerNormalization (the Encoder.norm) ----------
    o_ref[...] = _layer_norm(x, lnfa_ref[0], lnfb_ref[0])


@jax.jit
def encoder_forward(x, mask, params):
    (wq, wk, wv, wo, w1, b1, w2, b2,
     ln1a, ln1b, ln2a, ln2b, lnfa, lnfb) = params

    # Fuse Q/K/V weights once: (L, D, 3D).
    wqkv = jnp.concatenate([wq, wk, wv], axis=-1)
    # Expand the padding mask to a per-(head, batch) additive bias, ordered
    # the same way the kernel stacks heads: n = h*B + b.
    bias = jnp.where(mask == 0, -1e9, 0.0).astype(jnp.float32)     # (B, 1, S)
    bias = jnp.broadcast_to(bias, (B, S, S))
    bias = jnp.broadcast_to(bias[None], (H, B, S, S)).reshape(H * B, S, S)
    # Fold batch into the matmul row dim.
    x2 = x.reshape(B * S, D)

    n_in = 14
    vmem_spec = pl.BlockSpec(memory_space=pltpu.MemorySpace.VMEM)
    out = pl.pallas_call(
        encoder_kernel,
        out_shape=jax.ShapeDtypeStruct((B * S, D), jnp.float32),
        in_specs=[vmem_spec] * n_in,
        out_specs=pl.BlockSpec(memory_space=pltpu.MemorySpace.VMEM),
    )(bias, x2, wqkv, wo, w1, b1, w2, b2,
      ln1a, ln1b, ln2a, ln2b, lnfa, lnfb)
    return out.reshape(B, S, D)


def encoder_ref(x, mask, params):
    """Pure-JAX reference mirroring the PyTorch forward semantics."""
    (wq, wk, wv, wo, w1, b1, w2, b2,
     ln1a, ln1b, ln2a, ln2b, lnfa, lnfb) = params

    def ln(x, a, b):
        mean = jnp.mean(x, axis=-1, keepdims=True)
        diff = x - mean
        var = jnp.sum(diff * diff, axis=-1, keepdims=True) / (x.shape[-1] - 1)
        return a * diff / (jnp.sqrt(var) + EPS) + b

    for l in range(L):
        n1 = ln(x, ln1a[l], ln1b[l])
        q = (n1 @ wq[l]).reshape(B, S, H, DK).transpose(0, 2, 1, 3)
        k = (n1 @ wk[l]).reshape(B, S, H, DK).transpose(0, 2, 1, 3)
        v = (n1 @ wv[l]).reshape(B, S, H, DK).transpose(0, 2, 1, 3)
        s = jnp.einsum('bhqd,bhkd->bhqk', q, k) / math.sqrt(DK)
        s = jnp.where(mask[:, None, :, :] == 0, -1e9, s)
        p = jax.nn.softmax(s, axis=-1)
        o = jnp.einsum('bhqk,bhkd->bhqd', p, v).transpose(0, 2, 1, 3).reshape(B, S, D)
        x = x + o @ wo[l]
        n2 = ln(x, ln2a[l], ln2b[l])
        x = x + (jnp.maximum(n2 @ w1[l] + b1[l], 0.0) @ w2[l] + b2[l])
    return ln(x, lnfa[0], lnfb[0])


def make_params(key):
    ks = jax.random.split(key, 8)
    init = lambda k, shape: jax.random.normal(k, shape, jnp.float32) * 0.02
    wq = init(ks[0], (L, D, D))
    wk = init(ks[1], (L, D, D))
    wv = init(ks[2], (L, D, D))
    wo = init(ks[3], (L, D, D))
    w1 = init(ks[4], (L, D, DFF))
    b1 = jnp.zeros((L, DFF), jnp.float32)
    w2 = init(ks[5], (L, DFF, D))
    b2 = jnp.zeros((L, D), jnp.float32)
    ln1a = jnp.ones((L, D), jnp.float32)
    ln1b = jnp.zeros((L, D), jnp.float32)
    ln2a = jnp.ones((L, D), jnp.float32)
    ln2b = jnp.zeros((L, D), jnp.float32)
    lnfa = jnp.ones((1, D), jnp.float32)
    lnfb = jnp.zeros((1, D), jnp.float32)
    return (wq, wk, wv, wo, w1, b1, w2, b2,
            ln1a, ln1b, ln2a, ln2b, lnfa, lnfb)


if __name__ == "__main__":
    root = jax.random.PRNGKey(0)
    kp, kx = jax.random.split(root)
    params = make_params(kp)
    x = jax.random.normal(kx, (B, S, D), jnp.float32)
    # padding mask: batch 1 has its last 2 positions masked out
    mask = jnp.ones((B, 1, S), jnp.int32).at[1, 0, S - 2:].set(0)

    out = jax.block_until_ready(encoder_forward(x, mask, params))
    ref = jax.block_until_ready(encoder_ref(x, mask, params))
    np.testing.assert_allclose(np.asarray(out), np.asarray(ref),
                               rtol=1e-4, atol=1e-5)
    print("KERNEL_OK")
</pallas_src>

<mosaic_0001>
module attributes {stable_mosaic.version = 11 : i64} {
  func.func @encoder_kernel(%arg0: memref<8x8x8xf32, #tpu.memory_space<vmem>>, %arg1: memref<16x32xf32, #tpu.memory_space<vmem>>, %arg2: memref<2x32x96xf32, #tpu.memory_space<vmem>>, %arg3: memref<2x32x32xf32, #tpu.memory_space<vmem>>, %arg4: memref<2x32x64xf32, #tpu.memory_space<vmem>>, %arg5: memref<2x64xf32, #tpu.memory_space<vmem>>, %arg6: memref<2x64x32xf32, #tpu.memory_space<vmem>>, %arg7: memref<2x32xf32, #tpu.memory_space<vmem>>, %arg8: memref<2x32xf32, #tpu.memory_space<vmem>>, %arg9: memref<2x32xf32, #tpu.memory_space<vmem>>, %arg10: memref<2x32xf32, #tpu.memory_space<vmem>>, %arg11: memref<2x32xf32, #tpu.memory_space<vmem>>, %arg12: memref<1x32xf32, #tpu.memory_space<vmem>>, %arg13: memref<1x32xf32, #tpu.memory_space<vmem>>, %arg14: memref<16x32xf32, #tpu.memory_space<vmem>>) attributes {dimension_semantics = [], scalar_prefetch = 0 : i64, scratch_operands = 0 : i64, tpu.core_type = #tpu.core_type<tc>} {
    %c0 = arith.constant 0 : index
    %c0_0 = arith.constant 0 : index
    %0 = vector.load %arg1[%c0, %c0_0] : memref<16x32xf32, #tpu.memory_space<vmem>>, vector<16x32xf32>
    %c0_1 = arith.constant 0 : index
    %c0_2 = arith.constant 0 : index
    %c0_3 = arith.constant 0 : index
    %1 = vector.load %arg0[%c0_1, %c0_2, %c0_3] : memref<8x8x8xf32, #tpu.memory_space<vmem>>, vector<8x8x8xf32>
    %c0_4 = arith.constant 0 : index
    %c0_5 = arith.constant 0 : index
    %2 = vector.load %arg8[%c0_4, %c0_5] : memref<2x32xf32, #tpu.memory_space<vmem>>, vector<1x32xf32>
    %3 = vector.shape_cast %2 : vector<1x32xf32> to vector<32xf32>
    %c0_6 = arith.constant 0 : index
    %c0_7 = arith.constant 0 : index
    %4 = vector.load %arg9[%c0_6, %c0_7] : memref<2x32xf32, #tpu.memory_space<vmem>>, vector<1x32xf32>
    %5 = vector.shape_cast %4 : vector<1x32xf32> to vector<32xf32>
    %cst = arith.constant dense<0.000000e+00> : vector<16xf32>
    %6 = vector.multi_reduction <add>, %0, %cst [1] : vector<16x32xf32> to vector<16xf32>
    %7 = vector.shape_cast %6 : vector<16xf32> to vector<16x1xf32>
    %cst_8 = arith.constant 3.200000e+01 : f32
    %8 = vector.broadcast %cst_8 : f32 to vector<16x1xf32>
    %9 = arith.divf %7, %8 : vector<16x1xf32>
    %10 = vector.broadcast %9 : vector<16x1xf32> to vector<16x32xf32>
    %11 = arith.subf %0, %10 : vector<16x32xf32>
    %12 = arith.mulf %11, %11 : vector<16x32xf32>
    %cst_9 = arith.constant dense<0.000000e+00> : vector<16xf32>
    %13 = vector.multi_reduction <add>, %12, %cst_9 [1] : vector<16x32xf32> to vector<16xf32>
    %14 = vector.shape_cast %13 : vector<16xf32> to vector<16x1xf32>
    %cst_10 = arith.constant 0.0322580636 : f32
    %15 = vector.broadcast %cst_10 : f32 to vector<16x1xf32>
    %16 = arith.mulf %14, %15 : vector<16x1xf32>
    %17 = math.sqrt %16 : vector<16x1xf32>
    %cst_11 = arith.constant 9.99999997E-7 : f32
    %18 = vector.broadcast %cst_11 : f32 to vector<16x1xf32>
    %19 = arith.addf %17, %18 : vector<16x1xf32>
    %20 = tpu.reciprocal %19 : vector<16x1xf32> -> vector<16x1xf32>
    %21 = vector.broadcast %20 : vector<16x1xf32> to vector<16x32xf32>
    %22 = arith.mulf %11, %21 : vector<16x32xf32>
    %23 = vector.shape_cast %3 : vector<32xf32> to vector<1x32xf32>
    %24 = vector.broadcast %23 : vector<1x32xf32> to vector<16x32xf32>
    %25 = arith.mulf %24, %22 : vector<16x32xf32>
    %26 = vector.shape_cast %5 : vector<32xf32> to vector<1x32xf32>
    %27 = vector.broadcast %26 : vector<1x32xf32> to vector<16x32xf32>
    %28 = arith.addf %25, %27 : vector<16x32xf32>
    %c0_12 = arith.constant 0 : index
    %c0_13 = arith.constant 0 : index
    %c0_14 = arith.constant 0 : index
    %29 = vector.load %arg2[%c0_12, %c0_13, %c0_14] : memref<2x32x96xf32, #tpu.memory_space<vmem>>, vector<1x32x96xf32>
    %30 = vector.shape_cast %29 : vector<1x32x96xf32> to vector<32x96xf32>
    %cst_15 = arith.constant dense<0.000000e+00> : vector<16x96xf32>
    %31 = tpu.matmul %28, %30, %cst_15 {dimension_numbers = #tpu.dot_dimension_numbers<[1], [0], [0], [1], [0, 0, 1, 1], [], []>} : vector<16x32xf32>, vector<32x96xf32>, vector<16x96xf32> -> vector<16x96xf32>
    %32 = vector.shape_cast %31 : vector<16x96xf32> to vector<2x8x96xf32>
    %33 = vector.extract_strided_slice %32 {offsets = [0, 0, 0], sizes = [2, 8, 8], strides = [1, 1, 1]} : vector<2x8x96xf32> to vector<2x8x8xf32>
    %34 = vector.extract_strided_slice %32 {offsets = [0, 0, 8], sizes = [2, 8, 8], strides = [1, 1, 1]} : vector<2x8x96xf32> to vector<2x8x8xf32>
    %35 = vector.extract_strided_slice %32 {offsets = [0, 0, 16], sizes = [2, 8, 8], strides = [1, 1, 1]} : vector<2x8x96xf32> to vector<2x8x8xf32>
    %36 = vector.extract_strided_slice %32 {offsets = [0, 0, 24], sizes = [2, 8, 8], strides = [1, 1, 1]} : vector<2x8x96xf32> to vector<2x8x8xf32>
    %37 = tpu.concatenate %33, %34, %35, %36 in 0 : vector<2x8x8xf32>, vector<2x8x8xf32>, vector<2x8x8xf32>, vector<2x8x8xf32> -> vector<8x8x8xf32>
    %38 = vector.extract_strided_slice %32 {offsets = [0, 0, 32], sizes = [2, 8, 8], strides = [1, 1, 1]} : vector<2x8x96xf32> to vector<2x8x8xf32>
    %39 = vector.extract_strided_slice %32 {offsets = [0, 0, 40], sizes = [2, 8, 8], strides = [1, 1, 1]} : vector<2x8x96xf32> to vector<2x8x8xf32>
    %40 = vector.extract_strided_slice %32 {offsets = [0, 0, 48], sizes = [2, 8, 8], strides = [1, 1, 1]} : vector<2x8x96xf32> to vector<2x8x8xf32>
    %41 = vector.extract_strided_slice %32 {offsets = [0, 0, 56], sizes = [2, 8, 8], strides = [1, 1, 1]} : vector<2x8x96xf32> to vector<2x8x8xf32>
    %42 = tpu.concatenate %38, %39, %40, %41 in 0 : vector<2x8x8xf32>, vector<2x8x8xf32>, vector<2x8x8xf32>, vector<2x8x8xf32> -> vector<8x8x8xf32>
    %43 = vector.extract_strided_slice %32 {offsets = [0, 0, 64], sizes = [2, 8, 8], strides = [1, 1, 1]} : vector<2x8x96xf32> to vector<2x8x8xf32>
    %44 = vector.extract_strided_slice %32 {offsets = [0, 0, 72], sizes = [2, 8, 8], strides = [1, 1, 1]} : vector<2x8x96xf32> to vector<2x8x8xf32>
    %45 = vector.extract_strided_slice %32 {offsets = [0, 0, 80], sizes = [2, 8, 8], strides = [1, 1, 1]} : vector<2x8x96xf32> to vector<2x8x8xf32>
    %46 = vector.extract_strided_slice %32 {offsets = [0, 0, 88], sizes = [2, 8, 8], strides = [1, 1, 1]} : vector<2x8x96xf32> to vector<2x8x8xf32>
    %47 = tpu.concatenate %43, %44, %45, %46 in 0 : vector<2x8x8xf32>, vector<2x8x8xf32>, vector<2x8x8xf32>, vector<2x8x8xf32> -> vector<8x8x8xf32>
    "tpu.trace_start"() <{level = 10 : i32, message = "nqd,nkd->nqk"}> : () -> ()
    %cst_16 = arith.constant dense<0.000000e+00> : vector<8x8x8xf32>
    %48 = tpu.matmul %37, %42, %cst_16 {dimension_numbers = #tpu.dot_dimension_numbers<[2], [2], [1], [1], [0, 0, 0, 1, 1, 1], [0], [0]>} : vector<8x8x8xf32>, vector<8x8x8xf32>, vector<8x8x8xf32> -> vector<8x8x8xf32>
    "tpu.trace_stop"() : () -> ()
    %cst_17 = arith.constant 0.353553385 : f32
    %49 = vector.broadcast %cst_17 : f32 to vector<8x8x8xf32>
    %50 = arith.mulf %48, %49 : vector<8x8x8xf32>
    %51 = arith.addf %50, %1 : vector<8x8x8xf32>
    %cst_18 = arith.constant dense<0xFF800000> : vector<8x8xf32>
    %52 = vector.multi_reduction <maximumf>, %51, %cst_18 [2] : vector<8x8x8xf32> to vector<8x8xf32>
    %53 = vector.shape_cast %52 : vector<8x8xf32> to vector<8x8x1xf32>
    %54 = vector.broadcast %53 : vector<8x8x1xf32> to vector<8x8x8xf32>
    %55 = arith.subf %51, %54 : vector<8x8x8xf32>
    %56 = math.exp %55 : vector<8x8x8xf32>
    %cst_19 = arith.constant dense<0.000000e+00> : vector<8x8xf32>
    %57 = vector.multi_reduction <add>, %56, %cst_19 [2] : vector<8x8x8xf32> to vector<8x8xf32>
    %58 = vector.shape_cast %57 : vector<8x8xf32> to vector<8x8x1xf32>
    %59 = tpu.reciprocal %58 : vector<8x8x1xf32> -> vector<8x8x1xf32>
    %60 = vector.broadcast %59 : vector<8x8x1xf32> to vector<8x8x8xf32>
    %61 = arith.mulf %56, %60 : vector<8x8x8xf32>
    "tpu.trace_start"() <{level = 10 : i32, message = "nqk,nkd->nqd"}> : () -> ()
    %cst_20 = arith.constant dense<0.000000e+00> : vector<8x8x8xf32>
    %62 = tpu.matmul %61, %47, %cst_20 {dimension_numbers = #tpu.dot_dimension_numbers<[2], [1], [1], [2], [0, 0, 0, 1, 1, 2], [0], [0]>} : vector<8x8x8xf32>, vector<8x8x8xf32>, vector<8x8x8xf32> -> vector<8x8x8xf32>
    "tpu.trace_stop"() : () -> ()
    %63 = vector.extract_strided_slice %62 {offsets = [0, 0, 0], sizes = [2, 8, 8], strides = [1, 1, 1]} : vector<8x8x8xf32> to vector<2x8x8xf32>
    %64 = vector.shape_cast %63 : vector<2x8x8xf32> to vector<16x8xf32>
    %65 = vector.extract_strided_slice %62 {offsets = [2, 0, 0], sizes = [2, 8, 8], strides = [1, 1, 1]} : vector<8x8x8xf32> to vector<2x8x8xf32>
    %66 = vector.shape_cast %65 : vector<2x8x8xf32> to vector<16x8xf32>
    %67 = vector.extract_strided_slice %62 {offsets = [4, 0, 0], sizes = [2, 8, 8], strides = [1, 1, 1]} : vector<8x8x8xf32> to vector<2x8x8xf32>
    %68 = vector.shape_cast %67 : vector<2x8x8xf32> to vector<16x8xf32>
    %69 = vector.extract_strided_slice %62 {offsets = [6, 0, 0], sizes = [2, 8, 8], strides = [1, 1, 1]} : vector<8x8x8xf32> to vector<2x8x8xf32>
    %70 = vector.shape_cast %69 : vector<2x8x8xf32> to vector<16x8xf32>
    %71 = tpu.concatenate %64, %66, %68, %70 in 1 : vector<16x8xf32>, vector<16x8xf32>, vector<16x8xf32>, vector<16x8xf32> -> vector<16x32xf32>
    %c0_21 = arith.constant 0 : index
    %c0_22 = arith.constant 0 : index
    %c0_23 = arith.constant 0 : index
    %72 = vector.load %arg3[%c0_21, %c0_22, %c0_23] : memref<2x32x32xf32, #tpu.memory_space<vmem>>, vector<1x32x32xf32>
    %73 = vector.shape_cast %72 : vector<1x32x32xf32> to vector<32x32xf32>
    %cst_24 = arith.constant dense<0.000000e+00> : vector<16x32xf32>
    %74 = tpu.matmul %71, %73, %cst_24 {dimension_numbers = #tpu.dot_dimension_numbers<[1], [0], [0], [1], [0, 0, 1, 1], [], []>} : vector<16x32xf32>, vector<32x32xf32>, vector<16x32xf32> -> vector<16x32xf32>
    %75 = arith.addf %0, %74 : vector<16x32xf32>
    %c0_25 = arith.constant 0 : index
    %c0_26 = arith.constant 0 : index
    %76 = vector.load %arg10[%c0_25, %c0_26] : memref<2x32xf32, #tpu.memory_space<vmem>>, vector<1x32xf32>
    %77 = vector.shape_cast %76 : vector<1x32xf32> to vector<32xf32>
    %c0_27 = arith.constant 0 : index
    %c0_28 = arith.constant 0 : index
    %78 = vector.load %arg11[%c0_27, %c0_28] : memref<2x32xf32, #tpu.memory_space<vmem>>, vector<1x32xf32>
    %79 = vector.shape_cast %78 : vector<1x32xf32> to vector<32xf32>
    %cst_29 = arith.constant dense<0.000000e+00> : vector<16xf32>
    %80 = vector.multi_reduction <add>, %75, %cst_29 [1] : vector<16x32xf32> to vector<16xf32>
    %81 = vector.shape_cast %80 : vector<16xf32> to vector<16x1xf32>
    %cst_30 = arith.constant 3.200000e+01 : f32
    %82 = vector.broadcast %cst_30 : f32 to vector<16x1xf32>
    %83 = arith.divf %81, %82 : vector<16x1xf32>
    %84 = vector.broadcast %83 : vector<16x1xf32> to vector<16x32xf32>
    %85 = arith.subf %75, %84 : vector<16x32xf32>
    %86 = arith.mulf %85, %85 : vector<16x32xf32>
    %cst_31 = arith.constant dense<0.000000e+00> : vector<16xf32>
    %87 = vector.multi_reduction <add>, %86, %cst_31 [1] : vector<16x32xf32> to vector<16xf32>
    %88 = vector.shape_cast %87 : vector<16xf32> to vector<16x1xf32>
    %cst_32 = arith.constant 0.0322580636 : f32
    %89 = vector.broadcast %cst_32 : f32 to vector<16x1xf32>
    %90 = arith.mulf %88, %89 : vector<16x1xf32>
    %91 = math.sqrt %90 : vector<16x1xf32>
    %cst_33 = arith.constant 9.99999997E-7 : f32
    %92 = vector.broadcast %cst_33 : f32 to vector<16x1xf32>
    %93 = arith.addf %91, %92 : vector<16x1xf32>
    %94 = tpu.reciprocal %93 : vector<16x1xf32> -> vector<16x1xf32>
    %95 = vector.broadcast %94 : vector<16x1xf32> to vector<16x32xf32>
    %96 = arith.mulf %85, %95 : vector<16x32xf32>
    %97 = vector.shape_cast %77 : vector<32xf32> to vector<1x32xf32>
    %98 = vector.broadcast %97 : vector<1x32xf32> to vector<16x32xf32>
    %99 = arith.mulf %98, %96 : vector<16x32xf32>
    %100 = vector.shape_cast %79 : vector<32xf32> to vector<1x32xf32>
    %101 = vector.broadcast %100 : vector<1x32xf32> to vector<16x32xf32>
    %102 = arith.addf %99, %101 : vector<16x32xf32>
    %c0_34 = arith.constant 0 : index
    %c0_35 = arith.constant 0 : index
    %c0_36 = arith.constant 0 : index
    %103 = vector.load %arg4[%c0_34, %c0_35, %c0_36] : memref<2x32x64xf32, #tpu.memory_space<vmem>>, vector<1x32x64xf32>
    %104 = vector.shape_cast %103 : vector<1x32x64xf32> to vector<32x64xf32>
    %cst_37 = arith.constant dense<0.000000e+00> : vector<16x64xf32>
    %105 = tpu.matmul %102, %104, %cst_37 {dimension_numbers = #tpu.dot_dimension_numbers<[1], [0], [0], [1], [0, 0, 1, 1], [], []>} : vector<16x32xf32>, vector<32x64xf32>, vector<16x64xf32> -> vector<16x64xf32>
    %c0_38 = arith.constant 0 : index
    %c0_39 = arith.constant 0 : index
    %106 = vector.load %arg5[%c0_38, %c0_39] : memref<2x64xf32, #tpu.memory_space<vmem>>, vector<1x64xf32>
    %107 = vector.shape_cast %106 : vector<1x64xf32> to vector<64xf32>
    %108 = vector.shape_cast %107 : vector<64xf32> to vector<1x64xf32>
    %109 = vector.broadcast %108 : vector<1x64xf32> to vector<16x64xf32>
    %110 = arith.addf %105, %109 : vector<16x64xf32>
    %cst_40 = arith.constant 0.000000e+00 : f32
    %111 = vector.broadcast %cst_40 : f32 to vector<16x64xf32>
    %112 = arith.maximumf %110, %111 : vector<16x64xf32>
    %c0_41 = arith.constant 0 : index
    %c0_42 = arith.constant 0 : index
    %c0_43 = arith.constant 0 : index
    %113 = vector.load %arg6[%c0_41, %c0_42, %c0_43] : memref<2x64x32xf32, #tpu.memory_space<vmem>>, vector<1x64x32xf32>
    %114 = vector.shape_cast %113 : vector<1x64x32xf32> to vector<64x32xf32>
    %cst_44 = arith.constant dense<0.000000e+00> : vector<16x32xf32>
    %115 = tpu.matmul %112, %114, %cst_44 {dimension_numbers = #tpu.dot_dimension_numbers<[1], [0], [0], [1], [0, 0, 1, 1], [], []>} : vector<16x64xf32>, vector<64x32xf32>, vector<16x32xf32> -> vector<16x32xf32>
    %116 = arith.addf %75, %115 : vector<16x32xf32>
    %c0_45 = arith.constant 0 : index
    %c0_46 = arith.constant 0 : index
    %117 = vector.load %arg7[%c0_45, %c0_46] : memref<2x32xf32, #tpu.memory_space<vmem>>, vector<1x32xf32>
    %118 = vector.shape_cast %117 : vector<1x32xf32> to vector<32xf32>
    %119 = vector.shape_cast %118 : vector<32xf32> to vector<1x32xf32>
    %120 = vector.broadcast %119 : vector<1x32xf32> to vector<16x32xf32>
    %121 = arith.addf %116, %120 : vector<16x32xf32>
    %c1 = arith.constant 1 : index
    %c0_47 = arith.constant 0 : index
    %122 = vector.load %arg8[%c1, %c0_47] : memref<2x32xf32, #tpu.memory_space<vmem>>, vector<1x32xf32>
    %123 = vector.shape_cast %122 : vector<1x32xf32> to vector<32xf32>
    %c1_48 = arith.constant 1 : index
    %c0_49 = arith.constant 0 : index
    %124 = vector.load %arg9[%c1_48, %c0_49] : memref<2x32xf32, #tpu.memory_space<vmem>>, vector<1x32xf32>
    %125 = vector.shape_cast %124 : vector<1x32xf32> to vector<32xf32>
    %cst_50 = arith.constant dense<0.000000e+00> : vector<16xf32>
    %126 = vector.multi_reduction <add>, %121, %cst_50 [1] : vector<16x32xf32> to vector<16xf32>
    %127 = vector.shape_cast %126 : vector<16xf32> to vector<16x1xf32>
    %cst_51 = arith.constant 3.200000e+01 : f32
    %128 = vector.broadcast %cst_51 : f32 to vector<16x1xf32>
    %129 = arith.divf %127, %128 : vector<16x1xf32>
    %130 = vector.broadcast %129 : vector<16x1xf32> to vector<16x32xf32>
    %131 = arith.subf %121, %130 : vector<16x32xf32>
    %132 = arith.mulf %131, %131 : vector<16x32xf32>
    %cst_52 = arith.constant dense<0.000000e+00> : vector<16xf32>
    %133 = vector.multi_reduction <add>, %132, %cst_52 [1] : vector<16x32xf32> to vector<16xf32>
    %134 = vector.shape_cast %133 : vector<16xf32> to vector<16x1xf32>
    %cst_53 = arith.constant 0.0322580636 : f32
    %135 = vector.broadcast %cst_53 : f32 to vector<16x1xf32>
    %136 = arith.mulf %134, %135 : vector<16x1xf32>
    %137 = math.sqrt %136 : vector<16x1xf32>
    %cst_54 = arith.constant 9.99999997E-7 : f32
    %138 = vector.broadcast %cst_54 : f32 to vector<16x1xf32>
    %139 = arith.addf %137, %138 : vector<16x1xf32>
    %140 = tpu.reciprocal %139 : vector<16x1xf32> -> vector<16x1xf32>
    %141 = vector.broadcast %140 : vector<16x1xf32> to vector<16x32xf32>
    %142 = arith.mulf %131, %141 : vector<16x32xf32>
    %143 = vector.shape_cast %123 : vector<32xf32> to vector<1x32xf32>
    %144 = vector.broadcast %143 : vector<1x32xf32> to vector<16x32xf32>
    %145 = arith.mulf %144, %142 : vector<16x32xf32>
    %146 = vector.shape_cast %125 : vector<32xf32> to vector<1x32xf32>
    %147 = vector.broadcast %146 : vector<1x32xf32> to vector<16x32xf32>
    %148 = arith.addf %145, %147 : vector<16x32xf32>
    %c1_55 = arith.constant 1 : index
    %c0_56 = arith.constant 0 : index
    %c0_57 = arith.constant 0 : index
    %149 = vector.load %arg2[%c1_55, %c0_56, %c0_57] : memref<2x32x96xf32, #tpu.memory_space<vmem>>, vector<1x32x96xf32>
    %150 = vector.shape_cast %149 : vector<1x32x96xf32> to vector<32x96xf32>
    %cst_58 = arith.constant dense<0.000000e+00> : vector<16x96xf32>
    %151 = tpu.matmul %148, %150, %cst_58 {dimension_numbers = #tpu.dot_dimension_numbers<[1], [0], [0], [1], [0, 0, 1, 1], [], []>} : vector<16x32xf32>, vector<32x96xf32>, vector<16x96xf32> -> vector<16x96xf32>
    %152 = vector.shape_cast %151 : vector<16x96xf32> to vector<2x8x96xf32>
    %153 = vector.extract_strided_slice %152 {offsets = [0, 0, 0], sizes = [2, 8, 8], strides = [1, 1, 1]} : vector<2x8x96xf32> to vector<2x8x8xf32>
    %154 = vector.extract_strided_slice %152 {offsets = [0, 0, 8], sizes = [2, 8, 8], strides = [1, 1, 1]} : vector<2x8x96xf32> to vector<2x8x8xf32>
    %155 = vector.extract_strided_slice %152 {offsets = [0, 0, 16], sizes = [2, 8, 8], strides = [1, 1, 1]} : vector<2x8x96xf32> to vector<2x8x8xf32>
    %156 = vector.extract_strided_slice %152 {offsets = [0, 0, 24], sizes = [2, 8, 8], strides = [1, 1, 1]} : vector<2x8x96xf32> to vector<2x8x8xf32>
    %157 = tpu.concatenate %153, %154, %155, %156 in 0 : vector<2x8x8xf32>, vector<2x8x8xf32>, vector<2x8x8xf32>, vector<2x8x8xf32> -> vector<8x8x8xf32>
    %158 = vector.extract_strided_slice %152 {offsets = [0, 0, 32], sizes = [2, 8, 8], strides = [1, 1, 1]} : vector<2x8x96xf32> to vector<2x8x8xf32>
    %159 = vector.extract_strided_slice %152 {offsets = [0, 0, 40], sizes = [2, 8, 8], strides = [1, 1, 1]} : vector<2x8x96xf32> to vector<2x8x8xf32>
    %160 = vector.extract_strided_slice %152 {offsets = [0, 0, 48], sizes = [2, 8, 8], strides = [1, 1, 1]} : vector<2x8x96xf32> to vector<2x8x8xf32>
    %161 = vector.extract_strided_slice %152 {offsets = [0, 0, 56], sizes = [2, 8, 8], strides = [1, 1, 1]} : vector<2x8x96xf32> to vector<2x8x8xf32>
    %162 = tpu.concatenate %158, %159, %160, %161 in 0 : vector<2x8x8xf32>, vector<2x8x8xf32>, vector<2x8x8xf32>, vector<2x8x8xf32> -> vector<8x8x8xf32>
    %163 = vector.extract_strided_slice %152 {offsets = [0, 0, 64], sizes = [2, 8, 8], strides = [1, 1, 1]} : vector<2x8x96xf32> to vector<2x8x8xf32>
    %164 = vector.extract_strided_slice %152 {offsets = [0, 0, 72], sizes = [2, 8, 8], strides = [1, 1, 1]} : vector<2x8x96xf32> to vector<2x8x8xf32>
    %165 = vector.extract_strided_slice %152 {offsets = [0, 0, 80], sizes = [2, 8, 8], strides = [1, 1, 1]} : vector<2x8x96xf32> to vector<2x8x8xf32>
    %166 = vector.extract_strided_slice %152 {offsets = [0, 0, 88], sizes = [2, 8, 8], strides = [1, 1, 1]} : vector<2x8x96xf32> to vector<2x8x8xf32>
    %167 = tpu.concatenate %163, %164, %165, %166 in 0 : vector<2x8x8xf32>, vector<2x8x8xf32>, vector<2x8x8xf32>, vector<2x8x8xf32> -> vector<8x8x8xf32>
    "tpu.trace_start"() <{level = 10 : i32, message = "nqd,nkd->nqk"}> : () -> ()
    %cst_59 = arith.constant dense<0.000000e+00> : vector<8x8x8xf32>
    %168 = tpu.matmul %157, %162, %cst_59 {dimension_numbers = #tpu.dot_dimension_numbers<[2], [2], [1], [1], [0, 0, 0, 1, 1, 1], [0], [0]>} : vector<8x8x8xf32>, vector<8x8x8xf32>, vector<8x8x8xf32> -> vector<8x8x8xf32>
    "tpu.trace_stop"() : () -> ()
    %cst_60 = arith.constant 0.353553385 : f32
    %169 = vector.broadcast %cst_60 : f32 to vector<8x8x8xf32>
    %170 = arith.mulf %168, %169 : vector<8x8x8xf32>
    %171 = arith.addf %170, %1 : vector<8x8x8xf32>
    %cst_61 = arith.constant dense<0xFF800000> : vector<8x8xf32>
    %172 = vector.multi_reduction <maximumf>, %171, %cst_61 [2] : vector<8x8x8xf32> to vector<8x8xf32>
    %173 = vector.shape_cast %172 : vector<8x8xf32> to vector<8x8x1xf32>
    %174 = vector.broadcast %173 : vector<8x8x1xf32> to vector<8x8x8xf32>
    %175 = arith.subf %171, %174 : vector<8x8x8xf32>
    %176 = math.exp %175 : vector<8x8x8xf32>
    %cst_62 = arith.constant dense<0.000000e+00> : vector<8x8xf32>
    %177 = vector.multi_reduction <add>, %176, %cst_62 [2] : vector<8x8x8xf32> to vector<8x8xf32>
    %178 = vector.shape_cast %177 : vector<8x8xf32> to vector<8x8x1xf32>
    %179 = tpu.reciprocal %178 : vector<8x8x1xf32> -> vector<8x8x1xf32>
    %180 = vector.broadcast %179 : vector<8x8x1xf32> to vector<8x8x8xf32>
    %181 = arith.mulf %176, %180 : vector<8x8x8xf32>
    "tpu.trace_start"() <{level = 10 : i32, message = "nqk,nkd->nqd"}> : () -> ()
    %cst_63 = arith.constant dense<0.000000e+00> : vector<8x8x8xf32>
    %182 = tpu.matmul %181, %167, %cst_63 {dimension_numbers = #tpu.dot_dimension_numbers<[2], [1], [1], [2], [0, 0, 0, 1, 1, 2], [0], [0]>} : vector<8x8x8xf32>, vector<8x8x8xf32>, vector<8x8x8xf32> -> vector<8x8x8xf32>
    "tpu.trace_stop"() : () -> ()
    %183 = vector.extract_strided_slice %182 {offsets = [0, 0, 0], sizes = [2, 8, 8], strides = [1, 1, 1]} : vector<8x8x8xf32> to vector<2x8x8xf32>
    %184 = vector.shape_cast %183 : vector<2x8x8xf32> to vector<16x8xf32>
    %185 = vector.extract_strided_slice %182 {offsets = [2, 0, 0], sizes = [2, 8, 8], strides = [1, 1, 1]} : vector<8x8x8xf32> to vector<2x8x8xf32>
    %186 = vector.shape_cast %185 : vector<2x8x8xf32> to vector<16x8xf32>
    %187 = vector.extract_strided_slice %182 {offsets = [4, 0, 0], sizes = [2, 8, 8], strides = [1, 1, 1]} : vector<8x8x8xf32> to vector<2x8x8xf32>
    %188 = vector.shape_cast %187 : vector<2x8x8xf32> to vector<16x8xf32>
    %189 = vector.extract_strided_slice %182 {offsets = [6, 0, 0], sizes = [2, 8, 8], strides = [1, 1, 1]} : vector<8x8x8xf32> to vector<2x8x8xf32>
    %190 = vector.shape_cast %189 : vector<2x8x8xf32> to vector<16x8xf32>
    %191 = tpu.concatenate %184, %186, %188, %190 in 1 : vector<16x8xf32>, vector<16x8xf32>, vector<16x8xf32>, vector<16x8xf32> -> vector<16x32xf32>
    %c1_64 = arith.constant 1 : index
    %c0_65 = arith.constant 0 : index
    %c0_66 = arith.constant 0 : index
    %192 = vector.load %arg3[%c1_64, %c0_65, %c0_66] : memref<2x32x32xf32, #tpu.memory_space<vmem>>, vector<1x32x32xf32>
    %193 = vector.shape_cast %192 : vector<1x32x32xf32> to vector<32x32xf32>
    %cst_67 = arith.constant dense<0.000000e+00> : vector<16x32xf32>
    %194 = tpu.matmul %191, %193, %cst_67 {dimension_numbers = #tpu.dot_dimension_numbers<[1], [0], [0], [1], [0, 0, 1, 1], [], []>} : vector<16x32xf32>, vector<32x32xf32>, vector<16x32xf32> -> vector<16x32xf32>
    %195 = arith.addf %121, %194 : vector<16x32xf32>
    %c1_68 = arith.constant 1 : index
    %c0_69 = arith.constant 0 : index
    %196 = vector.load %arg10[%c1_68, %c0_69] : memref<2x32xf32, #tpu.memory_space<vmem>>, vector<1x32xf32>
    %197 = vector.shape_cast %196 : vector<1x32xf32> to vector<32xf32>
    %c1_70 = arith.constant 1 : index
    %c0_71 = arith.constant 0 : index
    %198 = vector.load %arg11[%c1_70, %c0_71] : memref<2x32xf32, #tpu.memory_space<vmem>>, vector<1x32xf32>
    %199 = vector.shape_cast %198 : vector<1x32xf32> to vector<32xf32>
    %cst_72 = arith.constant dense<0.000000e+00> : vector<16xf32>
    %200 = vector.multi_reduction <add>, %195, %cst_72 [1] : vector<16x32xf32> to vector<16xf32>
    %201 = vector.shape_cast %200 : vector<16xf32> to vector<16x1xf32>
    %cst_73 = arith.constant 3.200000e+01 : f32
    %202 = vector.broadcast %cst_73 : f32 to vector<16x1xf32>
    %203 = arith.divf %201, %202 : vector<16x1xf32>
    %204 = vector.broadcast %203 : vector<16x1xf32> to vector<16x32xf32>
    %205 = arith.subf %195, %204 : vector<16x32xf32>
    %206 = arith.mulf %205, %205 : vector<16x32xf32>
    %cst_74 = arith.constant dense<0.000000e+00> : vector<16xf32>
    %207 = vector.multi_reduction <add>, %206, %cst_74 [1] : vector<16x32xf32> to vector<16xf32>
    %208 = vector.shape_cast %207 : vector<16xf32> to vector<16x1xf32>
    %cst_75 = arith.constant 0.0322580636 : f32
    %209 = vector.broadcast %cst_75 : f32 to vector<16x1xf32>
    %210 = arith.mulf %208, %209 : vector<16x1xf32>
    %211 = math.sqrt %210 : vector<16x1xf32>
    %cst_76 = arith.constant 9.99999997E-7 : f32
    %212 = vector.broadcast %cst_76 : f32 to vector<16x1xf32>
    %213 = arith.addf %211, %212 : vector<16x1xf32>
    %214 = tpu.reciprocal %213 : vector<16x1xf32> -> vector<16x1xf32>
    %215 = vector.broadcast %214 : vector<16x1xf32> to vector<16x32xf32>
    %216 = arith.mulf %205, %215 : vector<16x32xf32>
    %217 = vector.shape_cast %197 : vector<32xf32> to vector<1x32xf32>
    %218 = vector.broadcast %217 : vector<1x32xf32> to vector<16x32xf32>
    %219 = arith.mulf %218, %216 : vector<16x32xf32>
    %220 = vector.shape_cast %199 : vector<32xf32> to vector<1x32xf32>
    %221 = vector.broadcast %220 : vector<1x32xf32> to vector<16x32xf32>
    %222 = arith.addf %219, %221 : vector<16x32xf32>
    %c1_77 = arith.constant 1 : index
    %c0_78 = arith.constant 0 : index
    %c0_79 = arith.constant 0 : index
    %223 = vector.load %arg4[%c1_77, %c0_78, %c0_79] : memref<2x32x64xf32, #tpu.memory_space<vmem>>, vector<1x32x64xf32>
    %224 = vector.shape_cast %223 : vector<1x32x64xf32> to vector<32x64xf32>
    %cst_80 = arith.constant dense<0.000000e+00> : vector<16x64xf32>
    %225 = tpu.matmul %222, %224, %cst_80 {dimension_numbers = #tpu.dot_dimension_numbers<[1], [0], [0], [1], [0, 0, 1, 1], [], []>} : vector<16x32xf32>, vector<32x64xf32>, vector<16x64xf32> -> vector<16x64xf32>
    %c1_81 = arith.constant 1 : index
    %c0_82 = arith.constant 0 : index
    %226 = vector.load %arg5[%c1_81, %c0_82] : memref<2x64xf32, #tpu.memory_space<vmem>>, vector<1x64xf32>
    %227 = vector.shape_cast %226 : vector<1x64xf32> to vector<64xf32>
    %228 = vector.shape_cast %227 : vector<64xf32> to vector<1x64xf32>
    %229 = vector.broadcast %228 : vector<1x64xf32> to vector<16x64xf32>
    %230 = arith.addf %225, %229 : vector<16x64xf32>
    %cst_83 = arith.constant 0.000000e+00 : f32
    %231 = vector.broadcast %cst_83 : f32 to vector<16x64xf32>
    %232 = arith.maximumf %230, %231 : vector<16x64xf32>
    %c1_84 = arith.constant 1 : index
    %c0_85 = arith.constant 0 : index
    %c0_86 = arith.constant 0 : index
    %233 = vector.load %arg6[%c1_84, %c0_85, %c0_86] : memref<2x64x32xf32, #tpu.memory_space<vmem>>, vector<1x64x32xf32>
    %234 = vector.shape_cast %233 : vector<1x64x32xf32> to vector<64x32xf32>
    %cst_87 = arith.constant dense<0.000000e+00> : vector<16x32xf32>
    %235 = tpu.matmul %232, %234, %cst_87 {dimension_numbers = #tpu.dot_dimension_numbers<[1], [0], [0], [1], [0, 0, 1, 1], [], []>} : vector<16x64xf32>, vector<64x32xf32>, vector<16x32xf32> -> vector<16x32xf32>
    %236 = arith.addf %195, %235 : vector<16x32xf32>
    %c1_88 = arith.constant 1 : index
    %c0_89 = arith.constant 0 : index
    %237 = vector.load %arg7[%c1_88, %c0_89] : memref<2x32xf32, #tpu.memory_space<vmem>>, vector<1x32xf32>
    %238 = vector.shape_cast %237 : vector<1x32xf32> to vector<32xf32>
    %239 = vector.shape_cast %238 : vector<32xf32> to vector<1x32xf32>
    %240 = vector.broadcast %239 : vector<1x32xf32> to vector<16x32xf32>
    %241 = arith.addf %236, %240 : vector<16x32xf32>
    %c0_90 = arith.constant 0 : index
    %c0_91 = arith.constant 0 : index
    %242 = vector.load %arg12[%c0_90, %c0_91] : memref<1x32xf32, #tpu.memory_space<vmem>>, vector<1x32xf32>
    %243 = vector.shape_cast %242 : vector<1x32xf32> to vector<32xf32>
    %c0_92 = arith.constant 0 : index
    %c0_93 = arith.constant 0 : index
    %244 = vector.load %arg13[%c0_92, %c0_93] : memref<1x32xf32, #tpu.memory_space<vmem>>, vector<1x32xf32>
    %245 = vector.shape_cast %244 : vector<1x32xf32> to vector<32xf32>
    %cst_94 = arith.constant dense<0.000000e+00> : vector<16xf32>
    %246 = vector.multi_reduction <add>, %241, %cst_94 [1] : vector<16x32xf32> to vector<16xf32>
    %247 = vector.shape_cast %246 : vector<16xf32> to vector<16x1xf32>
    %cst_95 = arith.constant 3.200000e+01 : f32
    %248 = vector.broadcast %cst_95 : f32 to vector<16x1xf32>
    %249 = arith.divf %247, %248 : vector<16x1xf32>
    %250 = vector.broadcast %249 : vector<16x1xf32> to vector<16x32xf32>
    %251 = arith.subf %241, %250 : vector<16x32xf32>
    %252 = arith.mulf %251, %251 : vector<16x32xf32>
    %cst_96 = arith.constant dense<0.000000e+00> : vector<16xf32>
    %253 = vector.multi_reduction <add>, %252, %cst_96 [1] : vector<16x32xf32> to vector<16xf32>
    %254 = vector.shape_cast %253 : vector<16xf32> to vector<16x1xf32>
    %cst_97 = arith.constant 0.0322580636 : f32
    %255 = vector.broadcast %cst_97 : f32 to vector<16x1xf32>
    %256 = arith.mulf %254, %255 : vector<16x1xf32>
    %257 = math.sqrt %256 : vector<16x1xf32>
    %cst_98 = arith.constant 9.99999997E-7 : f32
    %258 = vector.broadcast %cst_98 : f32 to vector<16x1xf32>
    %259 = arith.addf %257, %258 : vector<16x1xf32>
    %260 = tpu.reciprocal %259 : vector<16x1xf32> -> vector<16x1xf32>
    %261 = vector.broadcast %260 : vector<16x1xf32> to vector<16x32xf32>
    %262 = arith.mulf %251, %261 : vector<16x32xf32>
    %263 = vector.shape_cast %243 : vector<32xf32> to vector<1x32xf32>
    %264 = vector.broadcast %263 : vector<1x32xf32> to vector<16x32xf32>
    %265 = arith.mulf %264, %262 : vector<16x32xf32>
    %266 = vector.shape_cast %245 : vector<32xf32> to vector<1x32xf32>
    %267 = vector.broadcast %266 : vector<1x32xf32> to vector<16x32xf32>
    %268 = arith.addf %265, %267 : vector<16x32xf32>
    %c0_99 = arith.constant 0 : index
    %c0_100 = arith.constant 0 : index
    %269 = vector.load %arg14[%c0_99, %c0_100] : memref<16x32xf32, #tpu.memory_space<vmem>>, vector<16x32xf32>
    tpu.vector_store %arg14[%c0_99, %c0_100], %268 {strides = array<i32>} : memref<16x32xf32, #tpu.memory_space<vmem>>, vector<16x32xf32>,
    return
  }
}

</mosaic_0001>

<bundles_post_ra>
// kernel: encoder_forward.1
= control target key start
LH: loop header
LB: loop body
LE: loop exit
PB: predicated region body
PF: predicated region fallthrough
CT: control target
= control target key end

     0   :  { %vm60_vm0 = vcmask 261120   ;;  %s5294_s0 = inlined_call_operand.vmem [shape: f32[8,8,8], index: 0, kind: input, shape index: {}]   ;;  %s5295_s1 = inlined_call_operand.vmem [shape: f32[16,32], index: 1, kind: input, shape index: {}]   ;;  %s5296_s2 = inlined_call_operand.vmem [shape: f32[2,32,96], index: 2, kind: input, shape index: {}]   ;;  %s5297_s3 = inlined_call_operand.vmem [shape: f32[2,32,32], index: 3, kind: input, shape index: {}]   ;;  %s5298_s4 = inlined_call_operand.vmem [shape: f32[2,32,64], index: 4, kind: input, shape index: {}]   ;;  %s5299_s5 = inlined_call_operand.vmem [shape: f32[2,64], index: 5, kind: input, shape index: {}]   ;;  %s5300_s6 = inlined_call_operand.vmem [shape: f32[2,64,32], index: 6, kind: input, shape index: {}]   ;;  %s5301_s7 = inlined_call_operand.vmem [shape: f32[2,32], index: 7, kind: input, shape index: {}]   ;;  %s5302_s8 = inlined_call_operand.vmem [shape: f32[2,32], index: 8, kind: input, shape index: {}]   ;;  %s5303_s9 = inlined_call_operand.vmem [shape: f32[2,32], index: 9, kind: input, shape index: {}]   ;;  %s5304_s10 = inlined_call_operand.vmem [shape: f32[2,32], index: 10, kind: input, shape index: {}]   ;;  %s5305_s11 = inlined_call_operand.vmem [shape: f32[2,32], index: 11, kind: input, shape index: {}]   ;;  %s5306_s12 = inlined_call_operand.vmem [shape: f32[1,32], index: 12, kind: input, shape index: {}]   ;;  %s5307_s13 = inlined_call_operand.vmem [shape: f32[1,32], index: 13, kind: input, shape index: {}]   ;;  %s5308_s14 = inlined_call_operand.hbm [shape: f32[16,32], index: 14, kind: output, shape index: {}]  }
   0x1   :  { %v4604_v0 = vld [vmem:[%s5295_s1] sm:$0xff]  ;;  %v4609_v1 = vld [vmem:[%s5295_s1 + $0x8] sm:$0xff] }
   0x2   :  { %19 = vsyncpa [#allocation3], 0  ;;  %v61_v2 = vsel %vm60_vm0, %v4604_v0, 0.0  ;;  %v64_v3 = vsel %vm60_vm0, %v4609_v1, 0.0  ;;  %v114_v14 = vld [vmem:[%s5296_s2] sm:$0xff]  ;;  %v115_v15 = vld [vmem:[%s5296_s2 + $0x8] sm:$0xff] }
   0x3   :  { %62 = vadd.xlane.f32.xlu0 %v61_v2  ;;  %v116_v16 = vld [vmem:[%s5296_s2 + $0x10] sm:$0xff]  ;;  %v4294_v17 = vpack.c.bf16 %v115_v15, %v114_v14  ;;  %v117_v18 = vld [vmem:[%s5296_s2 + $0x18] sm:$0xff]  ;;  %v3812_v37 = vld [vmem:[%s5302_s8] ss:$0 sm:$0xff]  ;;  %v4514_v46 = vmov 0.0   ;;  %vm4515_vm5 = vmmov 0  }
   0x4   :  { %v4298_v19 = vpack.c.bf16 %v117_v18, %v116_v16  ;;  %v3813_v39 = vld [vmem:[%s5303_s9] ss:$0 sm:$0xff]  ;;  %4051 = vmatprep.subr.mxu0 %v4514_v46  ;;  %4053 = vmatprep.mubr.msk.f32.mxu0 %vm4515_vm5, %v4514_v46  ;;  %s4516_s28 = smov 120   ;;  %s4517_s29 = smov 112   ;;  %vm215_vm6 = vcmask 64512   ;;  %v4754_v14 = vld [vmem:[%s5294_s0 + $0x18] sm:$0xff] }
   0x5   :  { %4295 = vmatprep.subr.bf16.mxu1 %v4294_v17  ;;  %s4518_s30 = smov 104   ;;  %s4519_s15 = smov 96   ;;  %v4740_v2 = vld [vmem:[%s5294_s0] sm:$0xff]  ;;  %vm1560_vm7 = vcmask 130048   ;;  %vm1563_vm8 = vcmask 195584   ;;  %vm1807_vm13 = vcmask 523264  }
   0x6   :  { %4297 = vmatpush3.bf16.msra.mxu1 %v4294_v17  ;;  %s4521_s26 = smov 8   ;;  %s4522_s27 = smov 16  }
   0x7   :  { %65 = vadd.xlane.f32.xlu0 %v64_v3  ;;  %4299 = vmatprep.subr.bf16.mxu1 %v4298_v19  ;;  %s4523_s16 = smov 24  }
   0xa   :  { %4301 = vmatpush3.bf16.msra.mxu1 %v4298_v19 }
   0xb   :  { %4041 = vmatprep.subr.mxu1 %v4514_v46 }
  0x90   :  { %v63_v4 = vpop.xlane.xlu0 %62 }
  0x91   :  { %v68_v5 = vmul.f32 0.03125, %v63_v4 }
  0x93   :  { %v70_v6 = vsub.f32 %v4604_v0, %v68_v5 }
  0x94   :  { %v66_v7 = vpop.xlane.xlu0 %65 }
  0x95   :  { %v69_v8 = vmul.f32 0.03125, %v66_v7  ;;  %v72_v9 = vmul.f32 %v70_v6, %v70_v6 }
  0x97   :  { %v71_v10 = vsub.f32 %v4609_v1, %v69_v8  ;;  %v74_v11 = vsel %vm60_vm0, %v72_v9, 0.0  ;;  %v4747_v8 = vld [vmem:[%s5294_s0 + $0x8] sm:$0xff] }
  0x98   :  { %75 = vadd.xlane.f32.xlu1 %v74_v11 }
  0x99   :  { %v73_v12 = vmul.f32 %v71_v10, %v71_v10 }
  0x9b   :  { %v77_v13 = vsel %vm60_vm0, %v73_v12, 0.0 }
  0x9c   :  { %78 = vadd.xlane.f32.xlu1 %v77_v13 }
 0x125   :  { %v76_v20 = vpop.xlane.xlu1 %75 }
 0x126   :  { %v80_v21 = vmul.f32 0.032258064, %v76_v20  ;;  %v4759_v20 = vld [vmem:[%s5294_s0 + $0x10] sm:$0xff] }
 0x128   :  { %4386 = vrsqrt.f32 %v80_v21  ;;  %vm84_vm1 = vcmp.eq.f32.partialorder %v80_v21, inf  ;;  %v87_v26 = vand.u32 2147483648, %v80_v21  ;;  %vm86_vm2 = vcmp.eq.f32.partialorder %v80_v21, 0.0 }
 0x129   :  { %v79_v22 = vpop.xlane.xlu1 %78 }
 0x12a   :  { %v81_v23 = vmul.f32 0.032258064, %v79_v22 }
 0x12c   :  { %4388 = vrsqrt.f32 %v81_v23  ;;  %vm91_vm3 = vcmp.eq.f32.partialorder %v81_v23, inf  ;;  %v94_v32 = vand.u32 2147483648, %v81_v23  ;;  %vm93_vm4 = vcmp.eq.f32.partialorder %v81_v23, 0.0 }
 0x132   :  { %v4387_v24 = vpop.eup %4386 }
 0x133   :  { %v83_v25 = vmul.f32 %v4387_v24, %v80_v21 }
 0x135   :  { %v85_v27 = vsel %vm84_vm1, %v80_v21, %v83_v25 }
 0x136   :  { %v4389_v28 = vpop.eup %4388  ;;  %v88_v29 = vsel %vm86_vm2, %v87_v26, %v85_v27  ;;  %v4767_v27 = vld [vmem:[%s5294_s0 + $0x20] sm:$0xff] }
 0x137   :  { %v90_v30 = vmul.f32 %v4389_v28, %v81_v23  ;;  %v96_v31 = vadd.f32 1e-06, %v88_v29  ;;  %v4772_v29 = vld [vmem:[%s5294_s0 + $0x28] sm:$0xff] }
 0x139   :  { %v92_v33 = vsel %vm91_vm3, %v81_v23, %v90_v30  ;;  %4390 = vrcp.f32 %v96_v31 }
 0x13a   :  { %v95_v34 = vsel %vm93_vm4, %v94_v32, %v92_v33 }
 0x13b   :  { %v97_v35 = vadd.f32 1e-06, %v95_v34 }
 0x13d   :  { %4392 = vrcp.f32 %v97_v35 }
 0x143   :  { %v4391_v36 = vpop.eup %4390 }
 0x144   :  { %v100_v38 = vmul.f32 %v4391_v36, %v70_v6 }
 0x146   :  { %v106_v40 = vmul.f32 %v3812_v37, %v100_v38 }
 0x147   :  { %v4393_v41 = vpop.eup %4392 }
 0x148   :  { %v101_v42 = vmul.f32 %v4393_v41, %v71_v10  ;;  %v112_v43 = vadd.f32 %v3813_v39, %v106_v40  ;;  %v4785_v40 = vld [vmem:[%s5294_s0 + $0x38] sm:$0xff] }
 0x14a   :  { %v107_v44 = vmul.f32 %v3812_v37, %v101_v42  ;;  %4038 = vmatprep.mubr.msk.f32.mxu1 %vm60_vm0, %v112_v43  ;;  %v4779_v37 = vld [vmem:[%s5294_s0 + $0x30] sm:$0xff]  ;;  %s4520_s0 = smov 64  }
 0x14c   :  { %v113_v45 = vadd.f32 %v3813_v39, %v107_v44 }
 0x14e   :  { %4039 = vmatmul.mubr.msk.f32.vlgmr.msra.gmra.mrb[0].mxu1 %vm60_vm0, %v113_v45 }
 0x14f   :  { %4043 = vmatprep.mubr.msk.f32.mxu1 %vm4515_vm5, %v4514_v46 }
 0x221   :  { %v4645_v47 = vpop.f32.mrb[0].mxu1 }
 0x222   :  { %203 = vrot.lane.b32.xlu1 %v4645_v47, %s4516_s28  ;;  %v4649_v48 = vpop.f32.mrb[1].mxu1 }
 0x223   :  { %201 = vrot.lane.b32.xlu0 %v4649_v48, %s4516_s28 }
 0x226   :  { %205 = vrot.lane.b32.xlu1 %v4649_v48, %s4517_s29 }
 0x227   :  { %209 = vrot.lane.b32.xlu0 %v4649_v48, %s4518_s30 }
 0x22a   :  { %207 = vrot.lane.b32.xlu1 %v4645_v47, %s4517_s29 }
 0x22b   :  { %213 = vrot.lane.b32.xlu0 %v4649_v48, %s4519_s15 }
 0x22e   :  { %211 = vrot.lane.b32.xlu1 %v4645_v47, %s4518_s30 }
 0x232   :  { %290 = vrot.lane.b32.xlu1 %v4645_v47, %s4519_s15 }
 0x294   :  { %v4665_v49 = vpop.permute.xlu1 %203 }
 0x295   :  { %442 = vrot.lane.b32.xlu1 %v4665_v49, %s4519_s15  ;;  %v4669_v50 = vpop.permute.xlu0 %201 }
 0x296   :  { %366 = vrot.lane.b32.xlu0 %v4669_v50, %s4519_s15 }
 0x298   :  { %v4673_v51 = vpop.permute.xlu1 %205 }
 0x299   :  { %v4675_v52 = vpop.permute.xlu0 %209 }
 0x29a   :  { %518 = vrot.lane.b32.xlu0 %v4673_v51, %s4519_s15 }
 0x29c   :  { %v4679_v53 = vpop.permute.xlu1 %207 }
 0x29d   :  { %594 = vrot.lane.b32.xlu1 %v4679_v53, %s4519_s15  ;;  %v214_v54 = vpop.permute.xlu0 %213 }
 0x29e   :  { %670 = vrot.lane.b32.xlu0 %v4675_v52, %s4519_s15  ;;  %4042 = vmatpush3.xpose.msk.msra.mxu1 %vm215_vm6, %v214_v54 }
 0x29f   :  { %4046 = vmatprep.subr.mxu1 %v4514_v46 }
 0x2a0   :  { %v4687_v55 = vpop.permute.xlu1 %211 }
 0x2a1   :  { %746 = vrot.lane.b32.xlu1 %v4687_v55, %s4519_s15  ;;  %4044 = vmatmul.mubr.msk.f32.vlgmr.msra.gmra.mrb[2].mxu1 %vm215_vm6, %v4649_v48 }
 0x2a2   :  { %4048 = vmatprep.mubr.msk.f32.mxu1 %vm4515_vm5, %v4514_v46 }
 0x2a4   :  { %v291_v56 = vpop.permute.xlu1 %290 }
 0x2a5   :  { %4047 = vmatpush3.xpose.msk.msra.mxu1 %vm215_vm6, %v291_v56 }
 0x2a6   :  { %4056 = vmatprep.subr.mxu1 %v4514_v46 }
 0x2a8   :  { %4049 = vmatmul.mubr.msk.f32.vlgmr.msra.gmra.mrb[4].mxu1 %vm215_vm6, %v4645_v47 }
 0x2a9   :  { %4058 = vmatprep.mubr.msk.f32.mxu1 %vm4515_vm5, %v4514_v46 }
 0x307   :  { %v443_v57 = vpop.permute.xlu1 %442 }
 0x308   :  { %4057 = vmatpush3.xpose.msk.msra.mxu1 %vm215_vm6, %v443_v57  ;;  %v367_v58 = vpop.permute.xlu0 %366 }
 0x309   :  { %4052 = vmatpush3.xpose.msk.msra.mxu0 %vm215_vm6, %v367_v58  ;;  %4066 = vmatprep.subr.mxu1 %v4514_v46 }
 0x30a   :  { %4061 = vmatprep.subr.mxu0 %v4514_v46 }
 0x30b   :  { %4059 = vmatmul.mubr.msk.f32.vlgmr.msra.gmra.mrb[6].mxu1 %vm215_vm6, %v4665_v49 }
 0x30c   :  { %4054 = vmatmul.mubr.msk.f32.vlgmr.msra.gmra.mrb[0].mxu0 %vm215_vm6, %v4669_v50  ;;  %v519_v59 = vpop.permute.xlu0 %518  ;;  %4068 = vmatprep.mubr.msk.f32.mxu1 %vm4515_vm5, %v4514_v46 }
 0x30d   :  { %4062 = vmatpush3.xpose.msk.msra.mxu0 %vm215_vm6, %v519_v59  ;;  %4063 = vmatprep.mubr.msk.f32.mxu0 %vm4515_vm5, %v4514_v46 }
 0x30e   :  { %4071 = vmatprep.subr.mxu0 %v4514_v46 }
 0x30f   :  { %v595_v60 = vpop.permute.xlu1 %594 }
 0x310   :  { %4064 = vmatmul.mubr.msk.f32.vlgmr.msra.gmra.mrb[2].mxu0 %vm215_vm6, %v4673_v51  ;;  %4067 = vmatpush3.xpose.msk.msra.mxu1 %vm215_vm6, %v595_v60  ;;  %v671_v61 = vpop.permute.xlu0 %670 }
 0x311   :  { %4072 = vmatpush3.xpose.msk.msra.mxu0 %vm215_vm6, %v671_v61  ;;  %4073 = vmatprep.mubr.msk.f32.mxu0 %vm4515_vm5, %v4514_v46 }
 0x312   :  { %4076 = vmatprep.subr.mxu1 %v4514_v46  ;;  %4081 = vmatprep.subr.mxu0 %v4514_v46 }
 0x313   :  { %v747_v62 = vpop.permute.xlu1 %746  ;;  %4069 = vmatmul.mubr.msk.f32.vlgmr.msra.gmra.mrb[8].mxu1 %vm215_vm6, %v4679_v53 }
 0x314   :  { %4074 = vmatmul.mubr.msk.f32.vlgmr.msra.gmra.mrb[4].mxu0 %vm215_vm6, %v4675_v52  ;;  %4077 = vmatpush3.xpose.msk.msra.mxu1 %vm215_vm6, %v747_v62 }
 0x315   :  { %4078 = vmatprep.mubr.msk.f32.mxu1 %vm4515_vm5, %v4514_v46  ;;  %4086 = vmatprep.subr.mxu1 %v4514_v46 }
 0x316   :  { %4083 = vmatprep.mubr.msk.f32.mxu0 %vm4515_vm5, %v4514_v46 }
 0x317   :  { %4079 = vmatmul.mubr.msk.f32.vlgmr.msra.gmra.mrb[10].mxu1 %vm215_vm6, %v4687_v55 }
 0x318   :  { %4088 = vmatprep.mubr.msk.f32.mxu1 %vm4515_vm5, %v4514_v46 }
 0x374   :  { %v286_v63 = vpop.f32.mrb[2].mxu1 }
 0x375   :  { %v822_v3 = vmul.f32 0.35355338, %v286_v63  ;;  %v4045_v4 = vpop.f32.mrb[3].mxu1 }
 0x377   :  { %v830_v5 = vadd.f32 %v822_v3, %v4740_v2 }
 0x379   :  { %v838_v6 = vsel %vm215_vm6, %v830_v5, -inf }
 0x37a   :  { %839 = vmax.xlane.f32.xlu0 %v838_v6 }
 0x37b   :  { %v362_v7 = vpop.f32.mrb[4].mxu1 }
 0x37c   :  { %v823_v9 = vmul.f32 0.35355338, %v362_v7  ;;  %v4050_v10 = vpop.f32.mrb[5].mxu1 }
 0x37e   :  { %v831_v11 = vadd.f32 %v823_v9, %v4747_v8 }
 0x380   :  { %v841_v12 = vsel %vm215_vm6, %v831_v11, -inf }
 0x381   :  { %842 = vmax.xlane.f32.xlu1 %v841_v12 }
 0x3de   :  { %v514_v13 = vpop.f32.mrb[6].mxu1 }
 0x3df   :  { %v825_v15 = vmul.f32 0.35355338, %v514_v13  ;;  %v438_v16 = vpop.f32.mrb[0].mxu0  ;;  %v4060_v17 = vpop.f32.mrb[7].mxu1 }
 0x3e0   :  { %v824_v18 = vmul.f32 0.35355338, %v438_v16  ;;  %v4055_v19 = vpop.f32.mrb[1].mxu0 }
 0x3e1   :  { %v833_v21 = vadd.f32 %v825_v15, %v4754_v14 }
 0x3e2   :  { %v832_v24 = vadd.f32 %v824_v18, %v4759_v20 }
 0x3e3   :  { %v590_v22 = vpop.f32.mrb[2].mxu0  ;;  %v847_v23 = vsel %vm215_vm6, %v833_v21, -inf }
 0x3e4   :  { %v826_v25 = vmul.f32 0.35355338, %v590_v22  ;;  %848 = vmax.xlane.f32.xlu0 %v847_v23  ;;  %v4065_v26 = vpop.f32.mrb[3].mxu0  ;;  %v844_v33 = vsel %vm215_vm6, %v832_v24, -inf }
 0x3e6   :  { %v666_v28 = vpop.f32.mrb[8].mxu1  ;;  %v834_v34 = vadd.f32 %v826_v25, %v4767_v27 }
 0x3e7   :  { %v827_v30 = vmul.f32 0.35355338, %v666_v28  ;;  %v4070_v31 = vpop.f32.mrb[9].mxu1  ;;  %v742_v32 = vpop.f32.mrb[4].mxu0 }
 0x3e8   :  { %v828_v35 = vmul.f32 0.35355338, %v742_v32  ;;  %845 = vmax.xlane.f32.xlu0 %v844_v33  ;;  %v4075_v36 = vpop.f32.mrb[5].mxu0  ;;  %v850_v44 = vsel %vm215_vm6, %v834_v34, -inf }
 0x3e9   :  { %v835_v38 = vadd.f32 %v827_v30, %v4772_v29 }
 0x3ea   :  { %v818_v39 = vpop.f32.mrb[10].mxu1  ;;  %v836_v45 = vadd.f32 %v828_v35, %v4779_v37 }
 0x3eb   :  { %v829_v41 = vmul.f32 0.35355338, %v818_v39  ;;  %v4080_v42 = vpop.f32.mrb[11].mxu1  ;;  %v853_v43 = vsel %vm215_vm6, %v835_v38, -inf }
 0x3ec   :  { %854 = vmax.xlane.f32.xlu1 %v853_v43  ;;  %851 = vmax.xlane.f32.xlu0 %v850_v44  ;;  %v856_v57 = vsel %vm215_vm6, %v836_v45, -inf }
 0x3ed   :  { %v837_v54 = vadd.f32 %v829_v41, %v4785_v40 }
 0x3ef   :  { %v859_v56 = vsel %vm215_vm6, %v837_v54, -inf }
 0x3f0   :  { %860 = vmax.xlane.f32.xlu1 %v859_v56  ;;  %857 = vmax.xlane.f32.xlu0 %v856_v57 }
 0x401   :  { %1002 = vrot.lane.b32.xlu1 %v4645_v47, %s4520_s0 }
 0x405   :  { %1078 = vrot.lane.b32.xlu1 %v4669_v50, %s4520_s0 }
 0x406   :  { %926 = vrot.lane.b32.xlu0 %v4649_v48, %s4520_s0 }
 0x407   :  { %v840_v58 = vpop.xlane.xlu0 %839 }
 0x408   :  { %v862_v59 = vsub.f32 %v830_v5, %v840_v58 }
 0x409   :  { %1154 = vrot.lane.b32.xlu1 %v4665_v49, %s4520_s0 }
 0x40a   :  { %1230 = vrot.lane.b32.xlu0 %v4673_v51, %s4520_s0  ;;  %v870_v60 = vmul.f32 1.442695, %v862_v59 }
 0x40c   :  { %4394 = vpow2.f32 %v870_v60 }
 0x40d   :  { %1306 = vrot.lane.b32.xlu1 %v4679_v53, %s4520_s0 }
 0x40e   :  { %v843_v61 = vpop.xlane.xlu1 %842 }
 0x40f   :  { %v863_v47 = vsub.f32 %v831_v11, %v843_v61 }
 0x411   :  { %v872_v62 = vmul.f32 1.442695, %v863_v47 }
 0x413   :  { %4396 = vpow2.f32 %v872_v62 }
 0x416   :  { %v4805_v50 = vpop.eup %4394 }
 0x417   :  { %v886_v48 = vsel %vm215_vm6, %v4805_v50, 0.0 }
 0x41d   :  { %v4809_v49 = vpop.eup %4396 }
 0x41e   :  { %v889_v51 = vsel %vm215_vm6, %v4809_v49, 0.0 }
 0x429   :  { %887 = vadd.xlane.f32.xlu0 %v886_v48 }
 0x431   :  { %890 = vadd.xlane.f32.xlu1 %v889_v51 }
 0x471   :  { %v849_v53 = vpop.xlane.xlu0 %848 }
 0x472   :  { %v865_v63 = vsub.f32 %v833_v21, %v849_v53 }
 0x474   :  { %v876_v3 = vmul.f32 1.442695, %v865_v63 }
 0x475   :  { %v846_v4 = vpop.xlane.xlu0 %845 }
 0x476   :  { %4398 = vpow2.f32 %v876_v3  ;;  %v864_v5 = vsub.f32 %v832_v24, %v846_v4 }
 0x478   :  { %v874_v6 = vmul.f32 1.442695, %v864_v5 }
 0x479   :  { %v855_v7 = vpop.xlane.xlu1 %854  ;;  %v852_v9 = vpop.xlane.xlu0 %851 }
 0x47a   :  { %4400 = vpow2.f32 %v874_v6  ;;  %v867_v10 = vsub.f32 %v835_v38, %v855_v7  ;;  %v866_v11 = vsub.f32 %v834_v34, %v852_v9 }
 0x47c   :  { %v880_v12 = vmul.f32 1.442695, %v867_v10  ;;  %v878_v13 = vmul.f32 1.442695, %v866_v11 }
 0x47d   :  { %v861_v15 = vpop.xlane.xlu1 %860  ;;  %v858_v16 = vpop.xlane.xlu0 %857 }
 0x47e   :  { %4402 = vpow2.f32 %v880_v12  ;;  %v869_v17 = vsub.f32 %v837_v54, %v861_v15  ;;  %v868_v18 = vsub.f32 %v836_v45, %v858_v16  ;;  %v1566_v16 = vld [vmem:[%s5297_s3] sm:$0xff] }
 0x47f   :  { %4404 = vpow2.f32 %v878_v13 }
 0x480   :  { %v4399_v19 = vpop.eup %4398  ;;  %v884_v21 = vmul.f32 1.442695, %v869_v17  ;;  %v882_v22 = vmul.f32 1.442695, %v868_v18  ;;  %v1567_v17 = vld [vmem:[%s5297_s3 + $0x8] sm:$0xff] }
 0x481   :  { %v1003_v23 = vpop.permute.xlu1 %1002  ;;  %v927_v25 = vpop.permute.xlu0 %926  ;;  %v895_v24 = vsel %vm215_vm6, %v4399_v19, 0.0  ;;  %v4302_v18 = vpack.c.bf16 %v1567_v17, %v1566_v16  ;;  %v1802_v17 = vld [vmem:[%s5300_s6 + $0x18] sm:$0xff] }
 0x482   :  { %4406 = vpow2.f32 %v884_v21  ;;  %4087 = vmatpush3.msra.mxu1 %v1003_v23  ;;  %896 = vadd.xlane.f32.xlu1 %v895_v24  ;;  %v1569_v21 = vld [vmem:[%s5297_s3 + $0x18] sm:$0xff] }
 0x483   :  { %4408 = vpow2.f32 %v882_v22  ;;  %4082 = vmatpush3.msra.mxu0 %v927_v25  ;;  %4096 = vmatprep.subr.mxu1 %v4514_v46 }
 0x484   :  { %v4401_v26 = vpop.eup %4400  ;;  %4091 = vmatprep.subr.mxu0 %v4514_v46 }
 0x485   :  { %v892_v28 = vsel %vm215_vm6, %v4401_v26, 0.0  ;;  %v1079_v39 = vpop.permute.xlu1 %1078  ;;  %v1231_v41 = vpop.permute.xlu0 %1230 }
 0x486   :  { %893 = vadd.xlane.f32.xlu0 %v892_v28 }
 0x488   :  { %v4403_v30 = vpop.eup %4402 }
 0x489   :  { %v4405_v31 = vpop.eup %4404  ;;  %v901_v32 = vsel %vm215_vm6, %v4403_v30, 0.0  ;;  %v1155_v42 = vpop.permute.xlu1 %1154 }
 0x48a   :  { %902 = vadd.xlane.f32.xlu1 %v901_v32  ;;  %v898_v33 = vsel %vm215_vm6, %v4405_v31, 0.0 }
 0x48b   :  { %899 = vadd.xlane.f32.xlu0 %v898_v33 }
 0x48c   :  { %v4819_v34 = vpop.eup %4406 }
 0x48d   :  { %v4821_v35 = vpop.eup %4408  ;;  %v907_v36 = vsel %vm215_vm6, %v4819_v34, 0.0  ;;  %v1307_v44 = vpop.permute.xlu1 %1306 }
 0x48e   :  { %908 = vadd.xlane.f32.xlu1 %v907_v36  ;;  %v904_v38 = vsel %vm215_vm6, %v4821_v35, 0.0 }
 0x48f   :  { %905 = vadd.xlane.f32.xlu0 %v904_v38 }
 0x49f   :  { %1458 = vrot.lane.b32.xlu1 %v4687_v55, %s4520_s0 }
 0x4a5   :  { %1382 = vrot.lane.b32.xlu0 %v4675_v52, %s4520_s0 }
 0x4b6   :  { %v888_v43 = vpop.xlane.xlu0 %887 }
 0x4b7   :  { %4410 = vrcp.f32 %v888_v43 }
 0x4be   :  { %v891_v45 = vpop.xlane.xlu1 %890 }
 0x4bf   :  { %4412 = vrcp.f32 %v891_v45 }
 0x4c1   :  { %v4411_v54 = vpop.eup %4410 }
 0x4c2   :  { %v918_v56 = vmul.f32 %v4411_v54, %v4805_v50 }
 0x4c4   :  { %4084 = vmatmul.mubr.msk.f32.vlgmr.msra.gmra.mrb[6].mxu0 %vm215_vm6, %v918_v56 }
 0x4c5   :  { %4092 = vmatpush3.msra.mxu0 %v1079_v39  ;;  %4093 = vmatprep.mubr.msk.f32.mxu0 %vm4515_vm5, %v4514_v46 }
 0x4c6   :  { %4101 = vmatprep.subr.mxu0 %v4514_v46 }
 0x4c9   :  { %v4413_v52 = vpop.eup %4412 }
 0x4ca   :  { %v919_v55 = vmul.f32 %v4413_v52, %v4809_v49 }
 0x4cc   :  { %4089 = vmatmul.mubr.msk.f32.vlgmr.msra.gmra.mrb[12].mxu1 %vm215_vm6, %v919_v55 }
 0x4cd   :  { %4097 = vmatpush3.msra.mxu1 %v1155_v42  ;;  %4098 = vmatprep.mubr.msk.f32.mxu1 %vm4515_vm5, %v4514_v46 }
 0x4ce   :  { %4106 = vmatprep.subr.mxu1 %v4514_v46 }
 0x50f   :  { %v897_v57 = vpop.xlane.xlu1 %896 }
 0x510   :  { %4414 = vrcp.f32 %v897_v57 }
 0x513   :  { %v894_v58 = vpop.xlane.xlu0 %893 }
 0x514   :  { %4416 = vrcp.f32 %v894_v58 }
 0x517   :  { %v903_v59 = vpop.xlane.xlu1 %902 }
 0x518   :  { %4418 = vrcp.f32 %v903_v59  ;;  %v900_v60 = vpop.xlane.xlu0 %899 }
 0x519   :  { %4420 = vrcp.f32 %v900_v60 }
 0x51a   :  { %v4415_v61 = vpop.eup %4414 }
 0x51b   :  { %v921_v47 = vmul.f32 %v4415_v61, %v4399_v19  ;;  %v909_v62 = vpop.xlane.xlu1 %908  ;;  %v1568_v19 = vld [vmem:[%s5297_s3 + $0x10] sm:$0xff] }
 0x51c   :  { %4422 = vrcp.f32 %v909_v62  ;;  %v906_v50 = vpop.xlane.xlu0 %905  ;;  %v4306_v22 = vpack.c.bf16 %v1569_v21, %v1568_v19  ;;  %v1803_v19 = vld [vmem:[%s5300_s6 + $0x20] sm:$0xff]  ;;  %v1804_v21 = vld [vmem:[%s5300_s6 + $0x28] sm:$0xff] }
 0x51d   :  { %4424 = vrcp.f32 %v906_v50  ;;  %4099 = vmatmul.mubr.msk.f32.vlgmr.msra.gmra.mrb[14].mxu1 %vm215_vm6, %v921_v47 }
 0x51e   :  { %v4417_v48 = vpop.eup %4416  ;;  %4107 = vmatpush3.msra.mxu1 %v1307_v44  ;;  %4108 = vmatprep.mubr.msk.f32.mxu1 %vm4515_vm5, %v4514_v46 }
 0x51f   :  { %v920_v49 = vmul.f32 %v4417_v48, %v4401_v26  ;;  %4116 = vmatprep.subr.mxu1 %v4514_v46  ;;  %v1459_v4 = vpop.permute.xlu1 %1458 }
 0x520   :  { %v1383_v6 = vpop.permute.xlu0 %1382 }
 0x521   :  { %4094 = vmatmul.mubr.msk.f32.vlgmr.msra.gmra.mrb[8].mxu0 %vm215_vm6, %v920_v49 }
 0x522   :  { %v4419_v51 = vpop.eup %4418  ;;  %4102 = vmatpush3.msra.mxu0 %v1231_v41  ;;  %4103 = vmatprep.mubr.msk.f32.mxu0 %vm4515_vm5, %v4514_v46 }
 0x523   :  { %v4421_v53 = vpop.eup %4420  ;;  %v923_v63 = vmul.f32 %v4419_v51, %v4403_v30  ;;  %4111 = vmatprep.subr.mxu0 %v4514_v46 }
 0x524   :  { %v922_v3 = vmul.f32 %v4421_v53, %v4405_v31 }
 0x525   :  { %4109 = vmatmul.mubr.msk.f32.vlgmr.msra.gmra.mrb[16].mxu1 %vm215_vm6, %v923_v63 }
 0x526   :  { %v4423_v5 = vpop.eup %4422  ;;  %4104 = vmatmul.mubr.msk.f32.vlgmr.msra.gmra.mrb[10].mxu0 %vm215_vm6, %v922_v3  ;;  %4117 = vmatpush3.msra.mxu1 %v1459_v4 }
 0x527   :  { %v4425_v7 = vpop.eup %4424  ;;  %v925_v9 = vmul.f32 %v4423_v5, %v4819_v34  ;;  %4112 = vmatpush3.msra.mxu0 %v1383_v6  ;;  %4113 = vmatprep.mubr.msk.f32.mxu0 %vm4515_vm5, %v4514_v46  ;;  %v1707_v5 = vld [vmem:[%s5298_s4] sm:$0xff]  ;;  %v1708_v6 = vld [vmem:[%s5298_s4 + $0x8] sm:$0xff] }
 0x528   :  { %v924_v10 = vmul.f32 %v4425_v7, %v4821_v35  ;;  %4118 = vmatprep.mubr.msk.f32.mxu1 %vm4515_vm5, %v4514_v46  ;;  %4303 = vmatprep.subr.bf16.mxu0 %v4302_v18  ;;  %v1709_v7 = vld [vmem:[%s5298_s4 + $0x10] sm:$0xff] }
 0x529   :  { %4119 = vmatmul.mubr.msk.f32.vlgmr.msra.gmra.mrb[18].mxu1 %vm215_vm6, %v925_v9  ;;  %v4310_v9 = vpack.c.bf16 %v1708_v6, %v1707_v5 }
 0x52a   :  { %4114 = vmatmul.mubr.msk.f32.vlgmr.msra.gmra.mrb[12].mxu0 %vm215_vm6, %v924_v10  ;;  %v1710_v10 = vld [vmem:[%s5298_s4 + $0x18] sm:$0xff] }
 0x52b   :  { %4305 = vmatpush3.bf16.msra.mxu0 %v4302_v18  ;;  %4311 = vmatprep.subr.bf16.mxu1 %v4310_v9 }
 0x52c   :  { %4307 = vmatprep.subr.bf16.mxu0 %v4306_v22  ;;  %4313 = vmatpush3.bf16.msra.mxu1 %v4310_v9 }
 0x52f   :  { %4309 = vmatpush3.bf16.msra.mxu0 %v4306_v22  ;;  %v4326_v22 = vpack.c.bf16 %v1804_v21, %v1803_v19 }
 0x597   :  { %v998_v11 = vpop.f32.mrb[6].mxu0 }
 0x598   :  { %v4085_v12 = vpop.f32.mrb[7].mxu0 }
 0x599   :  { %v1799_v12 = vld [vmem:[%s5300_s6] sm:$0xff] }
 0x59f   :  { %v1074_v13 = vpop.f32.mrb[12].mxu1 }
 0x5a0   :  { %v4090_v15 = vpop.f32.mrb[13].mxu1 }
 0x5a1   :  { %v1801_v15 = vld [vmem:[%s5300_s6 + $0x10] sm:$0xff] }
 0x5a2   :  { %v4322_v18 = vpack.c.bf16 %v1802_v17, %v1801_v15 }
 0x5f0   :  { %v1226_v23 = vpop.f32.mrb[14].mxu1 }
 0x5f1   :  { %1538 = vrot.lane.b32.xlu1 %v1226_v23, %s4521_s26  ;;  %v4100_v25 = vpop.f32.mrb[15].mxu1 }
 0x5f4   :  { %v1150_v24 = vpop.f32.mrb[8].mxu0 }
 0x5f5   :  { %1536 = vrot.lane.b32.xlu0 %v1150_v24, %s4521_s26  ;;  %v4095_v26 = vpop.f32.mrb[9].mxu0 }
 0x5f8   :  { %v1378_v28 = vpop.f32.mrb[16].mxu1 }
 0x5f9   :  { %v1302_v30 = vpop.f32.mrb[10].mxu0  ;;  %1546 = vrot.lane.b32.xlu1 %v1378_v28, %s4522_s27  ;;  %v4110_v31 = vpop.f32.mrb[17].mxu1 }
 0x5fa   :  { %1544 = vrot.lane.b32.xlu0 %v1302_v30, %s4522_s27  ;;  %v4105_v32 = vpop.f32.mrb[11].mxu0 }
 0x5fc   :  { %v1530_v33 = vpop.f32.mrb[18].mxu1 }
 0x5fd   :  { %v1454_v34 = vpop.f32.mrb[12].mxu0  ;;  %1554 = vrot.lane.b32.xlu1 %v1530_v33, %s4523_s16  ;;  %v4120_v35 = vpop.f32.mrb[19].mxu1 }
 0x5fe   :  { %1552 = vrot.lane.b32.xlu0 %v1454_v34, %s4523_s16  ;;  %v4115_v36 = vpop.f32.mrb[13].mxu0 }
 0x663   :  { %v1539_v38 = vpop.permute.xlu1 %1538 }
 0x664   :  { %v1559_v43 = vsel %vm215_vm6, %v1074_v13, %v1539_v38  ;;  %v1800_v13 = vld [vmem:[%s5300_s6 + $0x8] sm:$0xff] }
 0x665   :  { %v4318_v16 = vpack.c.bf16 %v1800_v13, %v1799_v12 }
 0x667   :  { %v1537_v39 = vpop.permute.xlu0 %1536  ;;  %4319 = vmatprep.subr.bf16.mxu0 %v4318_v16 }
 0x668   :  { %v1558_v44 = vsel %vm215_vm6, %v998_v11, %v1537_v39  ;;  %v4314_v11 = vpack.c.bf16 %v1710_v10, %v1709_v7 }
 0x66a   :  { %4315 = vmatprep.subr.bf16.mxu1 %v4314_v11 }
 0x66b   :  { %v1547_v41 = vpop.permute.xlu1 %1546  ;;  %4317 = vmatpush3.bf16.msra.mxu1 %v4314_v11 }
 0x66c   :  { %v1545_v42 = vpop.permute.xlu0 %1544  ;;  %v1562_v45 = vsel %vm1560_vm7, %v1559_v43, %v1547_v41 }
 0x66d   :  { %v1561_v56 = vsel %vm1560_vm7, %v1558_v44, %v1545_v42  ;;  %v3842_v44 = vld [vmem:[%s5304_s10] ss:$0 sm:$0xff] }
 0x66f   :  { %v1555_v54 = vpop.permute.xlu1 %1554 }
 0x670   :  { %v1565_v52 = vsel %vm1563_vm8, %v1562_v45, %v1555_v54  ;;  %v1553_v55 = vpop.permute.xlu0 %1552  ;;  %v3843_v54 = vld [vmem:[%s5305_s11] ss:$0 sm:$0xff] }
 0x671   :  { %v1564_v57 = vsel %vm1563_vm8, %v1561_v56, %v1553_v55 }
 0x672   :  { %4129 = vmatprep.mubr.msk.f32.mxu0 %vm60_vm0, %v1564_v57 }
 0x673   :  { %4130 = vmatmul.mubr.msk.f32.vlgmr.msra.gmra.mrb[14].mxu0 %vm60_vm0, %v1565_v52 }
 0x674   :  { %4321 = vmatpush3.bf16.msra.mxu0 %v4318_v16 }
 0x675   :  { %4323 = vmatprep.subr.bf16.mxu0 %v4322_v18 }
 0x678   :  { %4325 = vmatpush3.bf16.msra.mxu0 %v4322_v18 }
 0x679   :  { %4327 = vmatprep.subr.bf16.mxu0 %v4326_v22 }
 0x67c   :  { %4329 = vmatpush3.bf16.msra.mxu0 %v4326_v22 }
 0x746   :  { %v4131_v58 = vpop.f32.mrb[14].mxu0 }
 0x747   :  { %v4886_v59 = vadd.f32 %v4131_v58, %v4609_v1  ;;  %v1642_v60 = vpop.f32.mrb[15].mxu0 }
 0x748   :  { %v4889_v61 = vadd.f32 %v1642_v60, %v4604_v0 }
 0x749   :  { %v1658_v47 = vsel %vm60_vm0, %v4886_v59, 0.0 }
 0x74a   :  { %1659 = vadd.xlane.f32.xlu1 %v1658_v47  ;;  %v1655_v62 = vsel %vm60_vm0, %v4889_v61, 0.0  ;;  %v1805_v47 = vld [vmem:[%s5300_s6 + $0x30] sm:$0xff] }
 0x74b   :  { %1656 = vadd.xlane.f32.xlu0 %v1655_v62  ;;  %v1806_v62 = vld [vmem:[%s5300_s6 + $0x38] sm:$0xff] }
 0x7d7   :  { %v1660_v50 = vpop.xlane.xlu1 %1659 }
 0x7d8   :  { %v1662_v48 = vmul.f32 0.03125, %v1660_v50  ;;  %v1657_v49 = vpop.xlane.xlu0 %1656  ;;  %v4330_v50 = vpack.c.bf16 %v1806_v62, %v1805_v47  ;;  %v3851_v62 = vld [vmem:[%s5303_s9 + $0x1] ss:$0 sm:$0xff] }
 0x7d9   :  { %v1661_v51 = vmul.f32 0.03125, %v1657_v49 }
 0x7da   :  { %v4896_v53 = vsub.f32 %v4886_v59, %v1662_v48  ;;  %4331 = vmatprep.subr.bf16.mxu0 %v4330_v50  ;;  %v3844_v48 = vld [vmem:[%s5299_s5] ss:$0 sm:$0xff] }
 0x7db   :  { %v1663_v1 = vsub.f32 %v4889_v61, %v1661_v51  ;;  %4333 = vmatpush3.bf16.msra.mxu0 %v4330_v50 }
 0x7dc   :  { %v1666_v3 = vmul.f32 %v4896_v53, %v4896_v53  ;;  %4183 = vmatprep.subr.mxu0 %v4514_v46 }
 0x7dd   :  { %v1665_v63 = vmul.f32 %v1663_v1, %v1663_v1 }
 0x7de   :  { %v1670_v4 = vsel %vm60_vm0, %v1666_v3, 0.0 }
 0x7df   :  { %v1667_v0 = vsel %vm60_vm0, %v1665_v63, 0.0 }
 0x7e0   :  { %1668 = vadd.xlane.f32.xlu0 %v1667_v0 }
 0x7e4   :  { %1671 = vadd.xlane.f32.xlu0 %v1670_v4  ;;  %v3849_v4 = vld [vmem:[%s5301_s7] ss:$0 sm:$0xff] }
 0x86d   :  { %v1669_v23 = vpop.xlane.xlu0 %1668 }
 0x86e   :  { %v1673_v25 = vmul.f32 0.032258064, %v1669_v23  ;;  %v3852_v23 = vld [vmem:[%s5296_s2 + $0x20] sm:$0xff] }
 0x870   :  { %4426 = vrsqrt.f32 %v1673_v25  ;;  %vm1677_vm9 = vcmp.eq.f32.partialorder %v1673_v25, inf  ;;  %v1680_v31 = vand.u32 2147483648, %v1673_v25  ;;  %vm1679_vm10 = vcmp.eq.f32.partialorder %v1673_v25, 0.0 }
 0x871   :  { %v1672_v24 = vpop.xlane.xlu0 %1671 }
 0x872   :  { %v1674_v26 = vmul.f32 0.032258064, %v1672_v24  ;;  %v3854_v24 = vld [vmem:[%s5296_s2 + $0x30] sm:$0xff] }
 0x874   :  { %4428 = vrsqrt.f32 %v1674_v26  ;;  %vm1684_vm11 = vcmp.eq.f32.partialorder %v1674_v26, inf  ;;  %v1687_v38 = vand.u32 2147483648, %v1674_v26  ;;  %vm1686_vm12 = vcmp.eq.f32.partialorder %v1674_v26, 0.0 }
 0x87a   :  { %v4427_v28 = vpop.eup %4426 }
 0x87b   :  { %v1676_v30 = vmul.f32 %v4427_v28, %v1673_v25  ;;  %v3855_v28 = vld [vmem:[%s5296_s2 + $0x38] sm:$0xff] }
 0x87d   :  { %v1678_v32 = vsel %vm1677_vm9, %v1673_v25, %v1676_v30  ;;  %v3853_v25 = vld [vmem:[%s5296_s2 + $0x28] sm:$0xff]  ;;  %v4338_v30 = vpack.c.bf16 %v3855_v28, %v3854_v24  ;;  %s4524_s2 = smov [#allocation2]  }
 0x87e   :  { %v4429_v33 = vpop.eup %4428  ;;  %v1681_v34 = vsel %vm1679_vm10, %v1680_v31, %v1678_v32  ;;  %s3801_s1 = sshll.u32 %s4524_s2, 4  ;;  %s3802_s1 = int_to_ptr.vmem [resolvable:$true] %s3801_s1 }
 0x87f   :  { %v1689_v35 = vadd.f32 1e-06, %v1681_v34  ;;  %v1683_v36 = vmul.f32 %v4429_v33, %v1674_v26  ;;  %s4490_s17 = scalar_lea.vmem %s3802_s1, 256  ;;  %p4495_p1 = scmp.lt.s32.totalorder %s3802_s1, %s3802_s1 }
 0x880   :  { %p4491_p0 = scmp.ne.s32.totalorder %s3802_s1, %s4490_s17  ;;  %p4496_p2 = scmp.lt.s32.totalorder %s4490_s17, %s4490_s17 }
 0x881   :  { %4430 = vrcp.f32 %v1689_v35  ;;  %v1685_v39 = vsel %vm1684_vm11, %v1674_v26, %v1683_v36  ;;  %v4334_v26 = vpack.c.bf16 %v3853_v25, %v3852_v23 }
 0x882   :  { %v1688_v41 = vsel %vm1686_vm12, %v1687_v38, %v1685_v39  ;;  %p4497_p3 = por %p4496_p2, %p4495_p1 }
 0x883   :  { %v1690_v42 = vadd.f32 1e-06, %v1688_v41  ;;  %4335 = vmatprep.subr.bf16.mxu1 %v4334_v26 }
 0x884   :  { %p4498_p4 = pnand %p4497_p3, %p4491_p0 }
 0x885   :  { %4432 = vrcp.f32 %v1690_v42 }
 0x88b   :  { %v4431_v43 = vpop.eup %4430 }
 0x88c   :  { %v1693_v45 = vmul.f32 %v4431_v43, %v1663_v1 }
 0x88e   :  { %v1699_v56 = vmul.f32 %v3842_v44, %v1693_v45 }
 0x88f   :  { %v4433_v52 = vpop.eup %4432 }
 0x890   :  { %v1694_v55 = vmul.f32 %v4433_v52, %v4896_v53  ;;  %v1705_v57 = vadd.f32 %v3843_v54, %v1699_v56 }
 0x892   :  { %v1700_v58 = vmul.f32 %v3842_v44, %v1694_v55  ;;  %4140 = vmatprep.mubr.msk.f32.mxu1 %vm60_vm0, %v1705_v57  ;;  %v3850_v57 = vld [vmem:[%s5302_s8 + $0x1] ss:$0 sm:$0xff] }
 0x894   :  { %v1706_v60 = vadd.f32 %v3843_v54, %v1700_v58 }
 0x896   :  { %4141 = vmatmul.mubr.msk.f32.vlgmr.msra.gmra.mrb[20].mxu1 %vm60_vm0, %v1706_v60 }
 0x897   :  { %4337 = vmatpush3.bf16.msra.mxu1 %v4334_v26 }
 0x898   :  { %4339 = vmatprep.subr.bf16.mxu1 %v4338_v30 }
 0x89b   :  { %4341 = vmatpush3.bf16.msra.mxu1 %v4338_v30 }
 0x89c   :  { %4173 = vmatprep.subr.mxu1 %v4514_v46 }
 0x969   :  { %v4142_v49 = vpop.f32.mrb[20].mxu1 }
 0x96a   :  { %v1794_v51 = vadd.f32 %v4142_v49, %v3844_v48  ;;  %v1788_v53 = vpop.f32.mrb[21].mxu1 }
 0x96b   :  { %v1789_v1 = vadd.f32 %v3844_v48, %v1788_v53 }
 0x96c   :  { %v1798_v0 = vmax.f32 %v1794_v51, 0.0 }
 0x96d   :  { %v1797_v63 = vmax.f32 %v1789_v1, 0.0 }
 0x96f   :  { %4159 = vmatprep.mubr.msk.f32.mxu0 %vm1807_vm13, %v1797_v63 }
 0x970   :  { %4160 = vmatmul.mubr.msk.f32.vlgmr.msra.gmra.mrb[16].mxu0 %vm1807_vm13, %v1798_v0 }
 0x971   :  { %4185 = vmatprep.mubr.msk.f32.mxu0 %vm4515_vm5, %v4514_v46 }
 0xa43   :  { %v4161_v3 = vpop.f32.mrb[16].mxu0 }
 0xa44   :  { %v1890_v5 = vadd.f32 %v4161_v3, %v4886_v59  ;;  %v1880_v6 = vpop.f32.mrb[17].mxu0 }
 0xa45   :  { %v1889_v7 = vadd.f32 %v1880_v6, %v4889_v61 }
 0xa46   :  { %v4961_v9 = vadd.f32 %v3849_v4, %v1890_v5 }
 0xa47   :  { %v4963_v10 = vadd.f32 %v3849_v4, %v1889_v7 }
 0xa48   :  { %v1903_v11 = vsel %vm60_vm0, %v4961_v9, 0.0 }
 0xa49   :  { %1904 = vadd.xlane.f32.xlu1 %v1903_v11  ;;  %v1900_v12 = vsel %vm60_vm0, %v4963_v10, 0.0 }
 0xa4a   :  { %1901 = vadd.xlane.f32.xlu0 %v1900_v12 }
 0xad6   :  { %v1905_v13 = vpop.xlane.xlu1 %1904 }
 0xad7   :  { %v1907_v15 = vmul.f32 0.03125, %v1905_v13  ;;  %v1902_v16 = vpop.xlane.xlu0 %1901 }
 0xad8   :  { %v1906_v17 = vmul.f32 0.03125, %v1902_v16 }
 0xad9   :  { %v1909_v59 = vsub.f32 %v4961_v9, %v1907_v15 }
 0xada   :  { %v1908_v61 = vsub.f32 %v4963_v10, %v1906_v17 }
 0xadb   :  { %v1911_v18 = vmul.f32 %v1909_v59, %v1909_v59 }
 0xadc   :  { %v1910_v19 = vmul.f32 %v1908_v61, %v1908_v61 }
 0xadd   :  { %v1915_v21 = vsel %vm60_vm0, %v1911_v18, 0.0 }
 0xade   :  { %1916 = vadd.xlane.f32.xlu1 %v1915_v21  ;;  %v1912_v22 = vsel %vm60_vm0, %v1910_v19, 0.0 }
 0xadf   :  { %1913 = vadd.xlane.f32.xlu0 %v1912_v22 }
 0xb6b   :  { %v1917_v31 = vpop.xlane.xlu1 %1916 }
 0xb6c   :  { %v1919_v32 = vmul.f32 0.032258064, %v1917_v31  ;;  %v1914_v33 = vpop.xlane.xlu0 %1913 }
 0xb6d   :  { %v1918_v34 = vmul.f32 0.032258064, %v1914_v33 }
 0xb6e   :  { %4434 = vrsqrt.f32 %v1919_v32  ;;  %vm1929_vm14 = vcmp.eq.f32.partialorder %v1919_v32, inf  ;;  %v1932_v39 = vand.u32 2147483648, %v1919_v32  ;;  %vm1931_vm15 = vcmp.eq.f32.partialorder %v1919_v32, 0.0 }
 0xb6f   :  { %4436 = vrsqrt.f32 %v1918_v34  ;;  %vm1922_vm1 = vcmp.eq.f32.partialorder %v1918_v34, inf  ;;  %v1925_v43 = vand.u32 2147483648, %v1918_v34  ;;  %vm1924_vm2 = vcmp.eq.f32.partialorder %v1918_v34, 0.0 }
 0xb78   :  { %v4435_v35 = vpop.eup %4434 }
 0xb79   :  { %v4437_v36 = vpop.eup %4436  ;;  %v1928_v38 = vmul.f32 %v4435_v35, %v1919_v32 }
 0xb7a   :  { %v1921_v41 = vmul.f32 %v4437_v36, %v1918_v34 }
 0xb7b   :  { %v1930_v42 = vsel %vm1929_vm14, %v1919_v32, %v1928_v38 }
 0xb7c   :  { %v1933_v44 = vsel %vm1931_vm15, %v1932_v39, %v1930_v42  ;;  %v1923_v45 = vsel %vm1922_vm1, %v1918_v34, %v1921_v41 }
 0xb7d   :  { %v1935_v54 = vadd.f32 1e-06, %v1933_v44  ;;  %v1926_v56 = vsel %vm1924_vm2, %v1925_v43, %v1923_v45 }
 0xb7e   :  { %v1934_v52 = vadd.f32 1e-06, %v1926_v56 }
 0xb7f   :  { %4438 = vrcp.f32 %v1935_v54 }
 0xb80   :  { %4440 = vrcp.f32 %v1934_v52 }
 0xb89   :  { %v4439_v55 = vpop.eup %4438 }
 0xb8a   :  { %v4441_v58 = vpop.eup %4440  ;;  %v1939_v60 = vmul.f32 %v4439_v55, %v1909_v59 }
 0xb8b   :  { %v1938_v47 = vmul.f32 %v4441_v58, %v1908_v61 }
 0xb8c   :  { %v1945_v50 = vmul.f32 %v3850_v57, %v1939_v60 }
 0xb8d   :  { %v1944_v48 = vmul.f32 %v3850_v57, %v1938_v47 }
 0xb8e   :  { %v1951_v51 = vadd.f32 %v3851_v62, %v1945_v50 }
 0xb8f   :  { %v1950_v49 = vadd.f32 %v3851_v62, %v1944_v48 }
 0xb91   :  { %4170 = vmatprep.mubr.msk.f32.mxu1 %vm60_vm0, %v1950_v49 }
 0xb92   :  { %4171 = vmatmul.mubr.msk.f32.vlgmr.msra.gmra.mrb[22].mxu1 %vm60_vm0, %v1951_v51 }
 0xb93   :  { %4175 = vmatprep.mubr.msk.f32.mxu1 %vm4515_vm5, %v4514_v46 }
 0xc65   :  { %v4996_v53 = vpop.f32.mrb[22].mxu1 }
 0xc66   :  { %2042 = vrot.lane.b32.xlu1 %v4996_v53, %s4516_s28  ;;  %v5000_v1 = vpop.f32.mrb[23].mxu1 }
 0xc67   :  { %2040 = vrot.lane.b32.xlu0 %v5000_v1, %s4516_s28 }
 0xc6a   :  { %2044 = vrot.lane.b32.xlu1 %v5000_v1, %s4517_s29 }
 0xc6b   :  { %2048 = vrot.lane.b32.xlu0 %v5000_v1, %s4518_s30 }
 0xc6e   :  { %2046 = vrot.lane.b32.xlu1 %v4996_v53, %s4517_s29 }
 0xc6f   :  { %2052 = vrot.lane.b32.xlu0 %v5000_v1, %s4519_s15 }
 0xc72   :  { %2050 = vrot.lane.b32.xlu1 %v4996_v53, %s4518_s30 }
 0xc76   :  { %2128 = vrot.lane.b32.xlu1 %v4996_v53, %s4519_s15 }
 0xcd8   :  { %v5016_v63 = vpop.permute.xlu1 %2042 }
 0xcd9   :  { %2280 = vrot.lane.b32.xlu1 %v5016_v63, %s4519_s15  ;;  %v5020_v0 = vpop.permute.xlu0 %2040 }
 0xcda   :  { %2204 = vrot.lane.b32.xlu0 %v5020_v0, %s4519_s15 }
 0xcdc   :  { %v5024_v3 = vpop.permute.xlu1 %2044 }
 0xcdd   :  { %v5026_v4 = vpop.permute.xlu0 %2048 }
 0xcde   :  { %2356 = vrot.lane.b32.xlu0 %v5024_v3, %s4519_s15 }
 0xce0   :  { %v5030_v5 = vpop.permute.xlu1 %2046 }
 0xce1   :  { %2432 = vrot.lane.b32.xlu1 %v5030_v5, %s4519_s15  ;;  %v2053_v6 = vpop.permute.xlu0 %2052 }
 0xce2   :  { %2508 = vrot.lane.b32.xlu0 %v5026_v4, %s4519_s15  ;;  %4174 = vmatpush3.xpose.msk.msra.mxu1 %vm215_vm6, %v2053_v6 }
 0xce3   :  { %4178 = vmatprep.subr.mxu1 %v4514_v46 }
 0xce4   :  { %v5038_v7 = vpop.permute.xlu1 %2050 }
 0xce5   :  { %2584 = vrot.lane.b32.xlu1 %v5038_v7, %s4519_s15  ;;  %4176 = vmatmul.mubr.msk.f32.vlgmr.msra.gmra.mrb[24].mxu1 %vm215_vm6, %v5000_v1 }
 0xce6   :  { %4180 = vmatprep.mubr.msk.f32.mxu1 %vm4515_vm5, %v4514_v46 }
 0xce8   :  { %v2129_v11 = vpop.permute.xlu1 %2128 }
 0xce9   :  { %4179 = vmatpush3.xpose.msk.msra.mxu1 %vm215_vm6, %v2129_v11 }
 0xcea   :  { %4188 = vmatprep.subr.mxu1 %v4514_v46 }
 0xcec   :  { %4181 = vmatmul.mubr.msk.f32.vlgmr.msra.gmra.mrb[26].mxu1 %vm215_vm6, %v4996_v53 }
 0xced   :  { %4190 = vmatprep.mubr.msk.f32.mxu1 %vm4515_vm5, %v4514_v46 }
 0xd4b   :  { %v2281_v12 = vpop.permute.xlu1 %2280 }
 0xd4c   :  { %4189 = vmatpush3.xpose.msk.msra.mxu1 %vm215_vm6, %v2281_v12  ;;  %v2205_v13 = vpop.permute.xlu0 %2204 }
 0xd4d   :  { %4184 = vmatpush3.xpose.msk.msra.mxu0 %vm215_vm6, %v2205_v13  ;;  %4198 = vmatprep.subr.mxu1 %v4514_v46 }
 0xd4e   :  { %4193 = vmatprep.subr.mxu0 %v4514_v46 }
 0xd4f   :  { %4191 = vmatmul.mubr.msk.f32.vlgmr.msra.gmra.mrb[28].mxu1 %vm215_vm6, %v5016_v63 }
 0xd50   :  { %4186 = vmatmul.mubr.msk.f32.vlgmr.msra.gmra.mrb[18].mxu0 %vm215_vm6, %v5020_v0  ;;  %v2357_v15 = vpop.permute.xlu0 %2356  ;;  %4200 = vmatprep.mubr.msk.f32.mxu1 %vm4515_vm5, %v4514_v46 }
 0xd51   :  { %4194 = vmatpush3.xpose.msk.msra.mxu0 %vm215_vm6, %v2357_v15  ;;  %4195 = vmatprep.mubr.msk.f32.mxu0 %vm4515_vm5, %v4514_v46 }
 0xd52   :  { %4203 = vmatprep.subr.mxu0 %v4514_v46 }
 0xd53   :  { %v2433_v16 = vpop.permute.xlu1 %2432 }
 0xd54   :  { %4196 = vmatmul.mubr.msk.f32.vlgmr.msra.gmra.mrb[20].mxu0 %vm215_vm6, %v5024_v3  ;;  %4199 = vmatpush3.xpose.msk.msra.mxu1 %vm215_vm6, %v2433_v16  ;;  %v2509_v17 = vpop.permute.xlu0 %2508 }
 0xd55   :  { %4204 = vmatpush3.xpose.msk.msra.mxu0 %vm215_vm6, %v2509_v17  ;;  %4205 = vmatprep.mubr.msk.f32.mxu0 %vm4515_vm5, %v4514_v46 }
 0xd56   :  { %4208 = vmatprep.subr.mxu1 %v4514_v46  ;;  %4213 = vmatprep.subr.mxu0 %v4514_v46 }
 0xd57   :  { %v2585_v59 = vpop.permute.xlu1 %2584  ;;  %4201 = vmatmul.mubr.msk.f32.vlgmr.msra.gmra.mrb[30].mxu1 %vm215_vm6, %v5030_v5 }
 0xd58   :  { %4206 = vmatmul.mubr.msk.f32.vlgmr.msra.gmra.mrb[22].mxu0 %vm215_vm6, %v5026_v4  ;;  %4209 = vmatpush3.xpose.msk.msra.mxu1 %vm215_vm6, %v2585_v59 }
 0xd59   :  { %4210 = vmatprep.mubr.msk.f32.mxu1 %vm4515_vm5, %v4514_v46  ;;  %4218 = vmatprep.subr.mxu1 %v4514_v46 }
 0xd5a   :  { %4215 = vmatprep.mubr.msk.f32.mxu0 %vm4515_vm5, %v4514_v46 }
 0xd5b   :  { %4211 = vmatmul.mubr.msk.f32.vlgmr.msra.gmra.mrb[32].mxu1 %vm215_vm6, %v5038_v7 }
 0xd5c   :  { %4220 = vmatprep.mubr.msk.f32.mxu1 %vm4515_vm5, %v4514_v46 }
 0xdb8   :  { %v2124_v61 = vpop.f32.mrb[24].mxu1 }
 0xdb9   :  { %v2660_v18 = vmul.f32 0.35355338, %v2124_v61  ;;  %v4177_v19 = vpop.f32.mrb[25].mxu1 }
 0xdbb   :  { %v2668_v21 = vadd.f32 %v2660_v18, %v4740_v2 }
 0xdbd   :  { %v2676_v22 = vsel %vm215_vm6, %v2668_v21, -inf }
 0xdbe   :  { %2677 = vmax.xlane.f32.xlu0 %v2676_v22 }
 0xdbf   :  { %v2200_v23 = vpop.f32.mrb[26].mxu1 }
 0xdc0   :  { %v2661_v25 = vmul.f32 0.35355338, %v2200_v23  ;;  %v4182_v24 = vpop.f32.mrb[27].mxu1 }
 0xdc2   :  { %v2669_v26 = vadd.f32 %v2661_v25, %v4747_v8 }
 0xdc4   :  { %v2679_v28 = vsel %vm215_vm6, %v2669_v26, -inf }
 0xdc5   :  { %2680 = vmax.xlane.f32.xlu1 %v2679_v28 }
 0xe22   :  { %v2352_v30 = vpop.f32.mrb[28].mxu1 }
 0xe23   :  { %v2663_v31 = vmul.f32 0.35355338, %v2352_v30  ;;  %v2276_v32 = vpop.f32.mrb[18].mxu0  ;;  %v4192_v33 = vpop.f32.mrb[29].mxu1 }
 0xe24   :  { %v2662_v34 = vmul.f32 0.35355338, %v2276_v32  ;;  %v4187_v35 = vpop.f32.mrb[19].mxu0 }
 0xe25   :  { %v2671_v36 = vadd.f32 %v2663_v31, %v4754_v14 }
 0xe26   :  { %v2670_v39 = vadd.f32 %v2662_v34, %v4759_v20 }
 0xe27   :  { %v2428_v2 = vpop.f32.mrb[20].mxu0  ;;  %v2685_v38 = vsel %vm215_vm6, %v2671_v36, -inf }
 0xe28   :  { %v2664_v41 = vmul.f32 0.35355338, %v2428_v2  ;;  %2686 = vmax.xlane.f32.xlu0 %v2685_v38  ;;  %v4197_v42 = vpop.f32.mrb[21].mxu0  ;;  %v2682_v54 = vsel %vm215_vm6, %v2670_v39, -inf }
 0xe2a   :  { %v2504_v8 = vpop.f32.mrb[30].mxu1  ;;  %v2672_v56 = vadd.f32 %v2664_v41, %v4767_v27 }
 0xe2b   :  { %v2665_v43 = vmul.f32 0.35355338, %v2504_v8  ;;  %v4202_v44 = vpop.f32.mrb[31].mxu1  ;;  %v2580_v45 = vpop.f32.mrb[22].mxu0 }
 0xe2c   :  { %v2666_v52 = vmul.f32 0.35355338, %v2580_v45  ;;  %2683 = vmax.xlane.f32.xlu0 %v2682_v54  ;;  %v4207_v55 = vpop.f32.mrb[23].mxu0  ;;  %v2688_v47 = vsel %vm215_vm6, %v2672_v56, -inf }
 0xe2d   :  { %v2673_v14 = vadd.f32 %v2665_v43, %v4772_v29 }
 0xe2e   :  { %v2656_v57 = vpop.f32.mrb[32].mxu1  ;;  %v2674_v62 = vadd.f32 %v2666_v52, %v4779_v37 }
 0xe2f   :  { %v2667_v58 = vmul.f32 0.35355338, %v2656_v57  ;;  %v4212_v60 = vpop.f32.mrb[33].mxu1  ;;  %v2691_v20 = vsel %vm215_vm6, %v2673_v14, -inf }
 0xe30   :  { %2692 = vmax.xlane.f32.xlu1 %v2691_v20  ;;  %2689 = vmax.xlane.f32.xlu0 %v2688_v47  ;;  %v2694_v48 = vsel %vm215_vm6, %v2674_v62, -inf }
 0xe31   :  { %v2675_v50 = vadd.f32 %v2667_v58, %v4785_v40 }
 0xe33   :  { %v2697_v27 = vsel %vm215_vm6, %v2675_v50, -inf }
 0xe34   :  { %2698 = vmax.xlane.f32.xlu1 %v2697_v27  ;;  %2695 = vmax.xlane.f32.xlu0 %v2694_v48 }
 0xe45   :  { %2840 = vrot.lane.b32.xlu1 %v4996_v53, %s4520_s0 }
 0xe49   :  { %2916 = vrot.lane.b32.xlu1 %v5020_v0, %s4520_s0 }
 0xe4a   :  { %2764 = vrot.lane.b32.xlu0 %v5000_v1, %s4520_s0 }
 0xe4b   :  { %v2678_v29 = vpop.xlane.xlu0 %2677 }
 0xe4c   :  { %v2700_v37 = vsub.f32 %v2668_v21, %v2678_v29 }
 0xe4d   :  { %2992 = vrot.lane.b32.xlu1 %v5016_v63, %s4520_s0 }
 0xe4e   :  { %3068 = vrot.lane.b32.xlu0 %v5024_v3, %s4520_s0  ;;  %v2708_v40 = vmul.f32 1.442695, %v2700_v37 }
 0xe50   :  { %4442 = vpow2.f32 %v2708_v40 }
 0xe51   :  { %3144 = vrot.lane.b32.xlu1 %v5030_v5, %s4520_s0 }
 0xe52   :  { %v2681_v49 = vpop.xlane.xlu1 %2680 }
 0xe53   :  { %v2701_v51 = vsub.f32 %v2669_v26, %v2681_v49 }
 0xe55   :  { %v2710_v53 = vmul.f32 1.442695, %v2701_v51 }
 0xe57   :  { %4444 = vpow2.f32 %v2710_v53 }
 0xe5a   :  { %v5116_v0 = vpop.eup %4442 }
 0xe5b   :  { %v2724_v1 = vsel %vm215_vm6, %v5116_v0, 0.0 }
 0xe61   :  { %v5120_v63 = vpop.eup %4444 }
 0xe62   :  { %v2727_v3 = vsel %vm215_vm6, %v5120_v63, 0.0 }
 0xe6d   :  { %2725 = vadd.xlane.f32.xlu0 %v2724_v1 }
 0xe75   :  { %2728 = vadd.xlane.f32.xlu1 %v2727_v3 }
 0xeb5   :  { %v2687_v5 = vpop.xlane.xlu0 %2686 }
 0xeb6   :  { %v2703_v6 = vsub.f32 %v2671_v36, %v2687_v5 }
 0xeb8   :  { %v2714_v11 = vmul.f32 1.442695, %v2703_v6 }
 0xeb9   :  { %v2684_v12 = vpop.xlane.xlu0 %2683 }
 0xeba   :  { %4446 = vpow2.f32 %v2714_v11  ;;  %v2702_v13 = vsub.f32 %v2670_v39, %v2684_v12 }
 0xebc   :  { %v2712_v15 = vmul.f32 1.442695, %v2702_v13 }
 0xebd   :  { %v2693_v16 = vpop.xlane.xlu1 %2692  ;;  %v2690_v17 = vpop.xlane.xlu0 %2689 }
 0xebe   :  { %4448 = vpow2.f32 %v2712_v15  ;;  %v2705_v59 = vsub.f32 %v2673_v14, %v2693_v16  ;;  %v2704_v61 = vsub.f32 %v2672_v56, %v2690_v17  ;;  %v3882_v15 = vld [vmem:[%s5297_s3 + $0x20] sm:$0xff]  ;;  %v3883_v16 = vld [vmem:[%s5297_s3 + $0x28] sm:$0xff] }
 0xebf   :  { %v4342_v17 = vpack.c.bf16 %v3883_v16, %v3882_v15 }
 0xec0   :  { %v2718_v18 = vmul.f32 1.442695, %v2705_v59  ;;  %v2716_v19 = vmul.f32 1.442695, %v2704_v61  ;;  %v3885_v59 = vld [vmem:[%s5297_s3 + $0x38] sm:$0xff] }
 0xec1   :  { %v2699_v21 = vpop.xlane.xlu1 %2698  ;;  %v2696_v22 = vpop.xlane.xlu0 %2695 }
 0xec2   :  { %4450 = vpow2.f32 %v2718_v18  ;;  %v2707_v23 = vsub.f32 %v2675_v50, %v2699_v21  ;;  %v2706_v25 = vsub.f32 %v2674_v62, %v2696_v22 }
 0xec3   :  { %4452 = vpow2.f32 %v2716_v19 }
 0xec4   :  { %v4447_v24 = vpop.eup %4446  ;;  %v2722_v26 = vmul.f32 1.442695, %v2707_v23  ;;  %v2720_v28 = vmul.f32 1.442695, %v2706_v25 }
 0xec5   :  { %v2841_v30 = vpop.permute.xlu1 %2840  ;;  %v2765_v31 = vpop.permute.xlu0 %2764  ;;  %v2733_v32 = vsel %vm215_vm6, %v4447_v24, 0.0 }
 0xec6   :  { %4454 = vpow2.f32 %v2722_v26  ;;  %4219 = vmatpush3.msra.mxu1 %v2841_v30  ;;  %2734 = vadd.xlane.f32.xlu1 %v2733_v32 }
 0xec7   :  { %4456 = vpow2.f32 %v2720_v28  ;;  %4214 = vmatpush3.msra.mxu0 %v2765_v31  ;;  %4228 = vmatprep.subr.mxu1 %v4514_v46 }
 0xec8   :  { %v4449_v33 = vpop.eup %4448  ;;  %4223 = vmatprep.subr.mxu0 %v4514_v46 }
 0xec9   :  { %v2730_v34 = vsel %vm215_vm6, %v4449_v33, 0.0  ;;  %v2917_v43 = vpop.permute.xlu1 %2916  ;;  %v3069_v44 = vpop.permute.xlu0 %3068 }
 0xeca   :  { %2731 = vadd.xlane.f32.xlu0 %v2730_v34 }
 0xecc   :  { %v4451_v35 = vpop.eup %4450 }
 0xecd   :  { %v4453_v36 = vpop.eup %4452  ;;  %v2739_v2 = vsel %vm215_vm6, %v4451_v35, 0.0  ;;  %v2993_v45 = vpop.permute.xlu1 %2992 }
 0xece   :  { %2740 = vadd.xlane.f32.xlu1 %v2739_v2  ;;  %v2736_v38 = vsel %vm215_vm6, %v4453_v36, 0.0 }
 0xecf   :  { %2737 = vadd.xlane.f32.xlu0 %v2736_v38 }
 0xed0   :  { %v5130_v39 = vpop.eup %4454 }
 0xed1   :  { %v5132_v41 = vpop.eup %4456  ;;  %v2745_v42 = vsel %vm215_vm6, %v5130_v39, 0.0  ;;  %v3145_v56 = vpop.permute.xlu1 %3144 }
 0xed2   :  { %2746 = vadd.xlane.f32.xlu1 %v2745_v42  ;;  %v2742_v8 = vsel %vm215_vm6, %v5132_v41, 0.0 }
 0xed3   :  { %2743 = vadd.xlane.f32.xlu0 %v2742_v8 }
 0xee3   :  { %3296 = vrot.lane.b32.xlu1 %v5038_v7, %s4520_s0 }
 0xee9   :  { %3220 = vrot.lane.b32.xlu0 %v5026_v4, %s4520_s0 }
 0xefa   :  { %v2726_v54 = vpop.xlane.xlu0 %2725 }
 0xefb   :  { %4458 = vrcp.f32 %v2726_v54 }
 0xf02   :  { %v2729_v52 = vpop.xlane.xlu1 %2728 }
 0xf03   :  { %4460 = vrcp.f32 %v2729_v52 }
 0xf05   :  { %v4459_v55 = vpop.eup %4458 }
 0xf06   :  { %v2756_v14 = vmul.f32 %v4459_v55, %v5116_v0 }
 0xf08   :  { %4216 = vmatmul.mubr.msk.f32.vlgmr.msra.gmra.mrb[24].mxu0 %vm215_vm6, %v2756_v14 }
 0xf09   :  { %4224 = vmatpush3.msra.mxu0 %v2917_v43  ;;  %4225 = vmatprep.mubr.msk.f32.mxu0 %vm4515_vm5, %v4514_v46 }
 0xf0a   :  { %4233 = vmatprep.subr.mxu0 %v4514_v46 }
 0xf0d   :  { %v4461_v4 = vpop.eup %4460 }
 0xf0e   :  { %v2757_v7 = vmul.f32 %v4461_v4, %v5120_v63 }
 0xf10   :  { %4221 = vmatmul.mubr.msk.f32.vlgmr.msra.gmra.mrb[34].mxu1 %vm215_vm6, %v2757_v7 }
 0xf11   :  { %4229 = vmatpush3.msra.mxu1 %v2993_v45  ;;  %4230 = vmatprep.mubr.msk.f32.mxu1 %vm4515_vm5, %v4514_v46 }
 0xf12   :  { %4238 = vmatprep.subr.mxu1 %v4514_v46 }
 0xf53   :  { %v2735_v57 = vpop.xlane.xlu1 %2734 }
 0xf54   :  { %4462 = vrcp.f32 %v2735_v57 }
 0xf57   :  { %v2732_v58 = vpop.xlane.xlu0 %2731 }
 0xf58   :  { %4464 = vrcp.f32 %v2732_v58 }
 0xf5b   :  { %v2741_v60 = vpop.xlane.xlu1 %2740 }
 0xf5c   :  { %4466 = vrcp.f32 %v2741_v60  ;;  %v2738_v20 = vpop.xlane.xlu0 %2737 }
 0xf5d   :  { %4468 = vrcp.f32 %v2738_v20 }
 0xf5e   :  { %v4463_v47 = vpop.eup %4462 }
 0xf5f   :  { %v2759_v62 = vmul.f32 %v4463_v47, %v4447_v24  ;;  %v2747_v50 = vpop.xlane.xlu1 %2746 }
 0xf60   :  { %4470 = vrcp.f32 %v2747_v50  ;;  %v2744_v27 = vpop.xlane.xlu0 %2743  ;;  %v3890_v50 = vld [vmem:[%s5298_s4 + $0x20] sm:$0xff] }
 0xf61   :  { %4472 = vrcp.f32 %v2744_v27  ;;  %4231 = vmatmul.mubr.msk.f32.vlgmr.msra.gmra.mrb[36].mxu1 %vm215_vm6, %v2759_v62  ;;  %v3891_v27 = vld [vmem:[%s5298_s4 + $0x28] sm:$0xff] }
 0xf62   :  { %v4465_v48 = vpop.eup %4464  ;;  %4239 = vmatpush3.msra.mxu1 %v3145_v56  ;;  %4240 = vmatprep.mubr.msk.f32.mxu1 %vm4515_vm5, %v4514_v46 }
 0xf63   :  { %v2758_v29 = vmul.f32 %v4465_v48, %v4449_v33  ;;  %4248 = vmatprep.subr.mxu1 %v4514_v46  ;;  %v3297_v53 = vpop.permute.xlu1 %3296  ;;  %v3892_v48 = vld [vmem:[%s5298_s4 + $0x30] sm:$0xff] }
 0xf64   :  { %v3221_v1 = vpop.permute.xlu0 %3220 }
 0xf65   :  { %4226 = vmatmul.mubr.msk.f32.vlgmr.msra.gmra.mrb[26].mxu0 %vm215_vm6, %v2758_v29  ;;  %v4350_v29 = vpack.c.bf16 %v3891_v27, %v3890_v50 }
 0xf66   :  { %v4467_v37 = vpop.eup %4466  ;;  %4234 = vmatpush3.msra.mxu0 %v3069_v44  ;;  %4235 = vmatprep.mubr.msk.f32.mxu0 %vm4515_vm5, %v4514_v46 }
 0xf67   :  { %v4469_v40 = vpop.eup %4468  ;;  %v2761_v49 = vmul.f32 %v4467_v37, %v4451_v35  ;;  %4243 = vmatprep.subr.mxu0 %v4514_v46  ;;  %v3893_v37 = vld [vmem:[%s5298_s4 + $0x38] sm:$0xff] }
 0xf68   :  { %v2760_v51 = vmul.f32 %v4469_v40, %v4453_v36  ;;  %v4354_v40 = vpack.c.bf16 %v3893_v37, %v3892_v48 }
 0xf69   :  { %4241 = vmatmul.mubr.msk.f32.vlgmr.msra.gmra.mrb[38].mxu1 %vm215_vm6, %v2761_v49  ;;  %v3897_v49 = vld [vmem:[%s5300_s6 + $0x40] sm:$0xff] }
 0xf6a   :  { %v4471_v0 = vpop.eup %4470  ;;  %4236 = vmatmul.mubr.msk.f32.vlgmr.msra.gmra.mrb[28].mxu0 %vm215_vm6, %v2760_v51  ;;  %4249 = vmatpush3.msra.mxu1 %v3297_v53  ;;  %v3898_v51 = vld [vmem:[%s5300_s6 + $0x48] sm:$0xff]  ;;  %v3899_v53 = vld [vmem:[%s5300_s6 + $0x50] sm:$0xff] }
 0xf6b   :  { %v4473_v63 = vpop.eup %4472  ;;  %v2763_v3 = vmul.f32 %v4471_v0, %v5130_v39  ;;  %4244 = vmatpush3.msra.mxu0 %v3221_v1  ;;  %4245 = vmatprep.mubr.msk.f32.mxu0 %vm4515_vm5, %v4514_v46  ;;  %v4358_v0 = vpack.c.bf16 %v3898_v51, %v3897_v49  ;;  %v3900_v1 = vld [vmem:[%s5300_s6 + $0x58] sm:$0xff] }
 0xf6c   :  { %v2762_v5 = vmul.f32 %v4473_v63, %v5132_v41  ;;  %4250 = vmatprep.mubr.msk.f32.mxu1 %vm4515_vm5, %v4514_v46  ;;  %4343 = vmatprep.subr.bf16.mxu0 %v4342_v17  ;;  %v3884_v46 = vld [vmem:[%s5297_s3 + $0x30] sm:$0xff]  ;;  %v4362_v63 = vpack.c.bf16 %v3900_v1, %v3899_v53 }
 0xf6d   :  { %4251 = vmatmul.mubr.msk.f32.vlgmr.msra.gmra.mrb[40].mxu1 %vm215_vm6, %v2763_v3  ;;  %v4346_v61 = vpack.c.bf16 %v3885_v59, %v3884_v46  ;;  %4351 = vmatprep.subr.bf16.mxu1 %v4350_v29  ;;  %v3901_v3 = vld [vmem:[%s5300_s6 + $0x60] sm:$0xff] }
 0xf6e   :  { %4246 = vmatmul.mubr.msk.f32.vlgmr.msra.gmra.mrb[30].mxu0 %vm215_vm6, %v2762_v5  ;;  %4353 = vmatpush3.bf16.msra.mxu1 %v4350_v29  ;;  %v3902_v5 = vld [vmem:[%s5300_s6 + $0x68] sm:$0xff] }
 0xf6f   :  { %4345 = vmatpush3.bf16.msra.mxu0 %v4342_v17  ;;  %4355 = vmatprep.subr.bf16.mxu1 %v4354_v40 }
 0xf70   :  { %4347 = vmatprep.subr.bf16.mxu0 %v4346_v61 }
 0xf72   :  { %4357 = vmatpush3.bf16.msra.mxu1 %v4354_v40 }
 0xf73   :  { %4349 = vmatpush3.bf16.msra.mxu0 %v4346_v61 }
 0xf74   :  { %4359 = vmatprep.subr.bf16.mxu0 %v4358_v0 }
 0xfdb   :  { %v2836_v6 = vpop.f32.mrb[24].mxu0 }
 0xfdc   :  { %v4217_v11 = vpop.f32.mrb[25].mxu0 }
 0xfe3   :  { %v2912_v12 = vpop.f32.mrb[34].mxu1 }
 0xfe4   :  { %v4222_v13 = vpop.f32.mrb[35].mxu1 }
0x1034   :  { %v3064_v18 = vpop.f32.mrb[36].mxu1 }
0x1035   :  { %3376 = vrot.lane.b32.xlu1 %v3064_v18, %s4521_s26  ;;  %v4232_v19 = vpop.f32.mrb[37].mxu1 }
0x1038   :  { %v2988_v21 = vpop.f32.mrb[26].mxu0 }
0x1039   :  { %3374 = vrot.lane.b32.xlu0 %v2988_v21, %s4521_s26  ;;  %v4227_v22 = vpop.f32.mrb[27].mxu0 }
0x103c   :  { %v3216_v23 = vpop.f32.mrb[38].mxu1 }
0x103d   :  { %v3140_v25 = vpop.f32.mrb[28].mxu0  ;;  %3384 = vrot.lane.b32.xlu1 %v3216_v23, %s4522_s27  ;;  %v4242_v24 = vpop.f32.mrb[39].mxu1 }
0x103e   :  { %3382 = vrot.lane.b32.xlu0 %v3140_v25, %s4522_s27  ;;  %v4237_v26 = vpop.f32.mrb[29].mxu0 }
0x1040   :  { %v3368_v28 = vpop.f32.mrb[40].mxu1 }
0x1041   :  { %v3292_v30 = vpop.f32.mrb[30].mxu0  ;;  %3392 = vrot.lane.b32.xlu1 %v3368_v28, %s4523_s16  ;;  %v4252_v31 = vpop.f32.mrb[41].mxu1  ;;  %v3888_v28 = vld [vmem:[%s5304_s10 + $0x1] ss:$0 sm:$0xff] }
0x1042   :  { %3390 = vrot.lane.b32.xlu0 %v3292_v30, %s4523_s16  ;;  %v4247_v32 = vpop.f32.mrb[31].mxu0  ;;  %v3889_v31 = vld [vmem:[%s5305_s11 + $0x1] ss:$0 sm:$0xff] }
0x10a7   :  { %v3377_v33 = vpop.permute.xlu1 %3376 }
0x10a8   :  { %v3397_v2 = vsel %vm215_vm6, %v2912_v12, %v3377_v33 }
0x10ab   :  { %v3375_v34 = vpop.permute.xlu0 %3374 }
0x10ac   :  { %v3396_v38 = vsel %vm215_vm6, %v2836_v6, %v3375_v34  ;;  %v4366_v6 = vpack.c.bf16 %v3902_v5, %v3901_v3 }
0x10af   :  { %v3385_v35 = vpop.permute.xlu1 %3384 }
0x10b0   :  { %v3383_v36 = vpop.permute.xlu0 %3382  ;;  %v3399_v39 = vsel %vm1560_vm7, %v3397_v2, %v3385_v35 }
0x10b1   :  { %v3398_v42 = vsel %vm1560_vm7, %v3396_v38, %v3383_v36  ;;  %v3903_v38 = vld [vmem:[%s5300_s6 + $0x70] sm:$0xff] }
0x10b3   :  { %v3393_v41 = vpop.permute.xlu1 %3392 }
0x10b4   :  { %v3401_v8 = vsel %vm1563_vm8, %v3399_v39, %v3393_v41  ;;  %v3391_v43 = vpop.permute.xlu0 %3390  ;;  %v3904_v39 = vld [vmem:[%s5300_s6 + $0x78] sm:$0xff] }
0x10b5   :  { %v3400_v44 = vsel %vm1563_vm8, %v3398_v42, %v3391_v43  ;;  %v4370_v41 = vpack.c.bf16 %v3904_v39, %v3903_v38  ;;  %v3894_v42 = vld [vmem:[%s5299_s5 + $0x1] ss:$0 sm:$0xff] }
0x10b6   :  { %4261 = vmatprep.mubr.msk.f32.mxu0 %vm60_vm0, %v3400_v44 }
0x10b7   :  { %4262 = vmatmul.mubr.msk.f32.vlgmr.msra.gmra.mrb[32].mxu0 %vm60_vm0, %v3401_v8 }
0x10b8   :  { %4361 = vmatpush3.bf16.msra.mxu0 %v4358_v0 }
0x10b9   :  { %4363 = vmatprep.subr.bf16.mxu0 %v4362_v63 }
0x10bc   :  { %4365 = vmatpush3.bf16.msra.mxu0 %v4362_v63 }
0x10bd   :  { %4367 = vmatprep.subr.bf16.mxu0 %v4366_v6 }
0x10c0   :  { %4369 = vmatpush3.bf16.msra.mxu0 %v4366_v6 }
0x10c1   :  { %4371 = vmatprep.subr.bf16.mxu0 %v4370_v41 }
0x10c4   :  { %4373 = vmatpush3.bf16.msra.mxu0 %v4370_v41 }
0x118a   :  { %v4263_v45 = vpop.f32.mrb[32].mxu0 }
0x118b   :  { %v5197_v54 = vadd.f32 %v4263_v45, %v4961_v9  ;;  %v3479_v56 = vpop.f32.mrb[33].mxu0 }
0x118c   :  { %v5200_v52 = vadd.f32 %v3479_v56, %v4963_v10 }
0x118d   :  { %v3495_v55 = vsel %vm60_vm0, %v5197_v54, 0.0 }
0x118e   :  { %3496 = vadd.xlane.f32.xlu1 %v3495_v55  ;;  %v3492_v14 = vsel %vm60_vm0, %v5200_v52, 0.0 }
0x118f   :  { %3493 = vadd.xlane.f32.xlu0 %v3492_v14 }
0x121b   :  { %v3497_v4 = vpop.xlane.xlu1 %3496 }
0x121c   :  { %v3499_v7 = vmul.f32 0.03125, %v3497_v4  ;;  %v3494_v57 = vpop.xlane.xlu0 %3493  ;;  %v3907_v4 = vld [vmem:[%s5301_s7 + $0x1] ss:$0 sm:$0xff] }
0x121d   :  { %v3498_v58 = vmul.f32 0.03125, %v3494_v57 }
0x121e   :  { %v5207_v60 = vsub.f32 %v5197_v54, %v3499_v7 }
0x121f   :  { %v3500_v9 = vsub.f32 %v5200_v52, %v3498_v58 }
0x1220   :  { %v3503_v47 = vmul.f32 %v5207_v60, %v5207_v60 }
0x1221   :  { %v3502_v20 = vmul.f32 %v3500_v9, %v3500_v9 }
0x1222   :  { %v3507_v62 = vsel %vm60_vm0, %v3503_v47, 0.0 }
0x1223   :  { %v3504_v10 = vsel %vm60_vm0, %v3502_v20, 0.0 }
0x1224   :  { %3505 = vadd.xlane.f32.xlu0 %v3504_v10 }
0x1228   :  { %3508 = vadd.xlane.f32.xlu0 %v3507_v62 }
0x12b1   :  { %v3506_v11 = vpop.xlane.xlu0 %3505 }
0x12b2   :  { %v3510_v12 = vmul.f32 0.032258064, %v3506_v11 }
0x12b4   :  { %4474 = vrsqrt.f32 %v3510_v12  ;;  %vm3514_vm3 = vcmp.eq.f32.partialorder %v3510_v12, inf  ;;  %v3517_v46 = vand.u32 2147483648, %v3510_v12  ;;  %vm3516_vm4 = vcmp.eq.f32.partialorder %v3510_v12, 0.0 }
0x12b5   :  { %v3509_v13 = vpop.xlane.xlu0 %3508 }
0x12b6   :  { %v3511_v15 = vmul.f32 0.032258064, %v3509_v13 }
0x12b8   :  { %4476 = vrsqrt.f32 %v3511_v15  ;;  %vm3521_vm5 = vcmp.eq.f32.partialorder %v3511_v15, inf  ;;  %v3524_v22 = vand.u32 2147483648, %v3511_v15  ;;  %vm3523_vm6 = vcmp.eq.f32.partialorder %v3511_v15, 0.0 }
0x12be   :  { %v4475_v16 = vpop.eup %4474 }
0x12bf   :  { %v3513_v17 = vmul.f32 %v4475_v16, %v3510_v12 }
0x12c1   :  { %v3515_v59 = vsel %vm3514_vm3, %v3510_v12, %v3513_v17 }
0x12c2   :  { %v4477_v61 = vpop.eup %4476  ;;  %v3518_v18 = vsel %vm3516_vm4, %v3517_v46, %v3515_v59 }
0x12c3   :  { %v3526_v19 = vadd.f32 1e-06, %v3518_v18  ;;  %v3520_v21 = vmul.f32 %v4477_v61, %v3511_v15  ;;  %v3908_v61 = vld [vmem:[%s5306_s12] ss:$0 sm:$0xff] }
0x12c5   :  { %4478 = vrcp.f32 %v3526_v19  ;;  %v3522_v23 = vsel %vm3521_vm5, %v3511_v15, %v3520_v21  ;;  %v3909_v21 = vld [vmem:[%s5307_s13] ss:$0 sm:$0xff] }
0x12c6   :  { %v3525_v25 = vsel %vm3523_vm6, %v3524_v22, %v3522_v23 }
0x12c7   :  { %v3527_v24 = vadd.f32 1e-06, %v3525_v25 }
0x12c9   :  { %4480 = vrcp.f32 %v3527_v24 }
0x12cf   :  { %v4479_v26 = vpop.eup %4478 }
0x12d0   :  { %v3530_v30 = vmul.f32 %v4479_v26, %v3500_v9 }
0x12d2   :  { %v3536_v32 = vmul.f32 %v3888_v28, %v3530_v30 }
0x12d3   :  { %v4481_v33 = vpop.eup %4480 }
0x12d4   :  { %v3531_v34 = vmul.f32 %v4481_v33, %v5207_v60  ;;  %v3542_v35 = vadd.f32 %v3889_v31, %v3536_v32 }
0x12d6   :  { %v3537_v36 = vmul.f32 %v3888_v28, %v3531_v34  ;;  %4272 = vmatprep.mubr.msk.f32.mxu1 %vm60_vm0, %v3542_v35 }
0x12d8   :  { %v3543_v2 = vadd.f32 %v3889_v31, %v3537_v36 }
0x12da   :  { %4273 = vmatmul.mubr.msk.f32.vlgmr.msra.gmra.mrb[42].mxu1 %vm60_vm0, %v3543_v2 }
0x13ad   :  { %v4274_v8 = vpop.f32.mrb[42].mxu1 }
0x13ae   :  { %v3632_v43 = vadd.f32 %v4274_v8, %v3894_v42  ;;  %v3626_v44 = vpop.f32.mrb[43].mxu1 }
0x13af   :  { %v3627_v45 = vadd.f32 %v3894_v42, %v3626_v44 }
0x13b0   :  { %v3636_v55 = vmax.f32 %v3632_v43, 0.0 }
0x13b1   :  { %v3635_v56 = vmax.f32 %v3627_v45, 0.0 }
0x13b3   :  { %4291 = vmatprep.mubr.msk.f32.mxu0 %vm1807_vm13, %v3635_v56 }
0x13b4   :  { %4292 = vmatmul.mubr.msk.f32.vlgmr.msra.gmra.mrb[34].mxu0 %vm1807_vm13, %v3636_v55 }
0x1487   :  { %v4293_v14 = vpop.f32.mrb[34].mxu0 }
0x1488   :  { %v3728_v7 = vadd.f32 %v4293_v14, %v5197_v54  ;;  %v3718_v57 = vpop.f32.mrb[35].mxu0 }
0x1489   :  { %v3727_v58 = vadd.f32 %v3718_v57, %v5200_v52 }
0x148a   :  { %v3735_v60 = vadd.f32 %v3907_v4, %v3728_v7 }
0x148b   :  { %v3734_v9 = vadd.f32 %v3907_v4, %v3727_v58 }
0x148c   :  { %v3741_v20 = vsel %vm60_vm0, %v3735_v60, 0.0 }
0x148d   :  { %3742 = vadd.xlane.f32.xlu1 %v3741_v20  ;;  %v3738_v10 = vsel %vm60_vm0, %v3734_v9, 0.0 }
0x148e   :  { %3739 = vadd.xlane.f32.xlu0 %v3738_v10 }
0x151a   :  { %v3743_v47 = vpop.xlane.xlu1 %3742 }
0x151b   :  { %v3745_v62 = vmul.f32 0.03125, %v3743_v47  ;;  %v3740_v50 = vpop.xlane.xlu0 %3739 }
0x151c   :  { %v3744_v27 = vmul.f32 0.03125, %v3740_v50 }
0x151d   :  { %v3747_v48 = vsub.f32 %v3735_v60, %v3745_v62 }
0x151e   :  { %v3746_v29 = vsub.f32 %v3734_v9, %v3744_v27 }
0x151f   :  { %v3749_v37 = vmul.f32 %v3747_v48, %v3747_v48 }
0x1520   :  { %v3748_v40 = vmul.f32 %v3746_v29, %v3746_v29 }
0x1521   :  { %v3753_v54 = vsel %vm60_vm0, %v3749_v37, 0.0 }
0x1522   :  { %3754 = vadd.xlane.f32.xlu1 %v3753_v54  ;;  %v3750_v52 = vsel %vm60_vm0, %v3748_v40, 0.0 }
0x1523   :  { %3751 = vadd.xlane.f32.xlu0 %v3750_v52 }
0x15af   :  { %v3755_v49 = vpop.xlane.xlu1 %3754 }
0x15b0   :  { %v3757_v51 = vmul.f32 0.032258064, %v3755_v49  ;;  %v3752_v53 = vpop.xlane.xlu0 %3751 }
0x15b1   :  { %v3756_v0 = vmul.f32 0.032258064, %v3752_v53 }
0x15b2   :  { %4482 = vrsqrt.f32 %v3757_v51  ;;  %vm3767_vm7 = vcmp.eq.f32.partialorder %v3757_v51, inf  ;;  %v3770_v5 = vand.u32 2147483648, %v3757_v51  ;;  %vm3769_vm8 = vcmp.eq.f32.partialorder %v3757_v51, 0.0 }
0x15b3   :  { %4484 = vrsqrt.f32 %v3756_v0  ;;  %vm3760_vm9 = vcmp.eq.f32.partialorder %v3756_v0, inf  ;;  %v3763_v12 = vand.u32 2147483648, %v3756_v0  ;;  %vm3762_vm10 = vcmp.eq.f32.partialorder %v3756_v0, 0.0 }
0x15bc   :  { %v4483_v1 = vpop.eup %4482 }
0x15bd   :  { %v4485_v63 = vpop.eup %4484  ;;  %v3766_v3 = vmul.f32 %v4483_v1, %v3757_v51 }
0x15be   :  { %v3759_v6 = vmul.f32 %v4485_v63, %v3756_v0 }
0x15bf   :  { %v3768_v11 = vsel %vm3767_vm7, %v3757_v51, %v3766_v3 }
0x15c0   :  { %v3771_v13 = vsel %vm3769_vm8, %v3770_v5, %v3768_v11  ;;  %v3761_v15 = vsel %vm3760_vm9, %v3756_v0, %v3759_v6 }
0x15c1   :  { %v3773_v16 = vadd.f32 1e-06, %v3771_v13  ;;  %v3764_v17 = vsel %vm3762_vm10, %v3763_v12, %v3761_v15 }
0x15c2   :  { %v3772_v46 = vadd.f32 1e-06, %v3764_v17 }
0x15c3   :  { %4486 = vrcp.f32 %v3773_v16 }
0x15c4   :  { %4488 = vrcp.f32 %v3772_v46 }
0x15cd   :  { %v4487_v59 = vpop.eup %4486 }
0x15ce   :  { %v4489_v18 = vpop.eup %4488  ;;  %v3777_v19 = vmul.f32 %v4487_v59, %v3747_v48 }
0x15cf   :  { %v3776_v22 = vmul.f32 %v4489_v18, %v3746_v29 }
0x15d0   :  { %v3785_v23 = vmul.f32 %v3908_v61, %v3777_v19 }
0x15d1   :  { %v3784_v25 = vmul.f32 %v3908_v61, %v3776_v22 }
0x15d2   :  { %v3793_v24 = vadd.f32 %v3909_v21, %v3785_v23 }
0x15d3   :  { %v3792_v26 = vadd.f32 %v3909_v21, %v3784_v25 }
0x15d4   :  { %3795 = vst.msk [vmem:[#allocation2 + $0x8] sm:$0xff] %vm60_vm0, %v3793_v24 }
0x15d5   :  { %3794 = vst.msk [vmem:[#allocation2] sm:$0xff] %vm60_vm0, %v3792_v26 }
0x15d6   :  { %4501 = shalt.err (!%p4498_p4)
}
0x15d7   :  { %s4502_s18 = scalar_lea.hbm %s5308_s14, 256 }
0x15d8   :  { %p4503_p5 = scmp.ne.s32.totalorder %s5308_s14, %s4502_s18  ;;  %p4506_p6 = scmp.lt.u32.totalorder %s4502_s18, %s5308_s14 }
0x15da   :  { %p4508_p7 = pnand %p4506_p6, %p4503_p5 }
0x15dc   :  { %4511 = shalt.err (!%p4508_p7)
}
0x15dd   :  { %s4525_s29 = smov 128  }
0x15de   :  { %3807 = dma.vmem_to_hbm [thread:$0]  %s3802_s1, 256, %s5308_s14, [#allocation3], %s4525_s29, %s4525_s29, %s4521_s26  }
0x15df   :  { %4512 = dma.done.wait [#allocation3], 256  }
0x15e0   :  { %4513 = vsyncadd [#allocation3], 4294967040 }
0x15e1   :  { %3811 = vsyncpa [#allocation3], 1 }

</bundles_post_ra>
